<compile_context>
chip_gen: v6e
topology: v6e:2x2x1
jax: 0.10.0
libtpu: 0.0.40
codegen_flags: <defaults>
</compile_context>

<pallas_src>
import functools
import math

import jax
import jax.numpy as jnp
from jax.experimental import pallas as pl
from jax.experimental.pallas import tpu as pltpu

_BN_EPS = 1e-5
_PAD_OFF = 8                      # sublane-aligned column offset of the conv2
                                  # input interior inside the VMEM scratch
_DEF_MXU_DTYPE = jnp.bfloat16


# ------------------------------ fused kernel -------------------------------

def _fused_block_kernel(x_ref, w1_ref, b1_ref, w2_ref, b2_ref, *rest,
                        offs1, offs2, ho, wo, cout, cp1, mode, off_sc,
                        pad_off, mxu_dtype):
    """Whole ResidualBlock for one batch element.

    x_ref  : (1, Hp, Wp, Cp)  spatially padded (stride 1) or phase-packed
                              (stride 2) input, mxu dtype (f32 for identity)
    w1_ref : (T1, Cp, Cout)   conv1 tap weights, BN1 scale folded, mxu dtype
    b1_ref : (1, Cout)        BN1 folded bias, f32
    w2_ref : (9, Cout, Cout)  conv2 tap weights, BN2 scale folded, mxu dtype
    b2_ref : (1, Cout)        BN2 folded bias, f32
    rest   : [wsc_ref, bsc_ref] (mode=="conv1x1") or [sc_ref] (mode=="pool"),
             then o_ref (1, Ho*Wo, Cout) and the padded VMEM scratch.
    """
    pad_ref = rest[-1]
    o_ref = rest[-2]
    extras = rest[:-2]
    m = ho * wo
    f32 = jnp.float32

    # Memoized shifted-window materialization: every window is copied out of
    # the VMEM-resident input at most once (the shortcut reuses a conv1 tap
    # window instead of re-materializing it).
    win_cache = {}

    def x_window(a0, b0):
        # unit-stride static window of the (phase-packed) padded input
        if (a0, b0) not in win_cache:
            v = x_ref[0, a0:a0 + ho, b0:b0 + wo, :]
            win_cache[(a0, b0)] = v.reshape(m, cp1)
        return win_cache[(a0, b0)]

    # ---- conv1 (+ folded BN1) + ReLU : shifted-window dots on the MXU ------
    a0, b0 = offs1[0]
    acc = jnp.dot(x_window(a0, b0).astype(mxu_dtype), w1_ref[0],
                  preferred_element_type=f32)
    for t in range(1, len(offs1)):
        a0, b0 = offs1[t]
        acc = acc + jnp.dot(x_window(a0, b0).astype(mxu_dtype), w1_ref[t],
                            preferred_element_type=f32)
    h1 = jnp.maximum(acc + b1_ref[...], 0.0)            # f32 epilogue

    # Stash ReLU(out1) in a zero-padded VMEM scratch (never leaves HBM);
    # interior is stored at a sublane-aligned column offset (pad_off).
    pad_ref[...] = jnp.zeros_like(pad_ref)
    pad_ref[1:1 + ho, pad_off:pad_off + wo, :] = (
        h1.reshape(ho, wo, cout).astype(pad_ref.dtype))

    # ---- conv2 (+ folded BN2) : 9 shifted-window dots out of the scratch ---
    def h_window(dh, dw):
        v = pad_ref[dh:dh + ho, pad_off - 1 + dw:pad_off - 1 + dw + wo, :]
        return v.reshape(m, cout)

    dh, dw = offs2[0]
    acc2 = jnp.dot(h_window(dh, dw), w2_ref[0], preferred_element_type=f32)
    for t in range(1, len(offs2)):
        dh, dw = offs2[t]
        acc2 = acc2 + jnp.dot(h_window(dh, dw), w2_ref[t],
                              preferred_element_type=f32)
    y = acc2 + b2_ref[...]

    # ---- shortcut -----------------------------------------------------------
    if mode == "conv1x1":
        wsc_ref, bsc_ref = extras                       # folded 1x1 conv + BN
        sc = jnp.dot(x_window(*off_sc).astype(mxu_dtype), wsc_ref[...],
                     preferred_element_type=f32) + bsc_ref[...]
    elif mode == "pool":
        (sc_ref,) = extras                              # wrapper-pooled, f32
        sc = sc_ref[0].astype(f32)
    else:                                               # identity
        sc = x_window(*off_sc).astype(f32)

    o_ref[0, :, :] = jnp.maximum(y + sc, 0.0).astype(o_ref.dtype)


# ------------------------------- the module --------------------------------

class ResidualBlockPallas:
    """Pallas port of the PyTorch ResidualBlock (inference BN semantics)."""

    def __init__(self, in_channels, out_channels, stride, down_sample,
                 zero_padding, key, mxu_dtype=_DEF_MXU_DTYPE):
        if stride not in (1, 2):
            raise NotImplementedError("stride must be 1 or 2")
        self.in_channels = in_channels
        self.out_channels = out_channels
        self.stride = stride
        self.down_sample = down_sample
        self.zero_padding = zero_padding
        self.mxu_dtype = mxu_dtype

        keys = jax.random.split(key, 6)

        def conv_w(k, co, ci, ks):
            fan_in = ci * ks * ks
            bound = 1.0 / math.sqrt(fan_in)
            return jax.random.uniform(k, (co, ci, ks, ks), jnp.float32,
                                      -bound, bound)

        def bn_params(k):
            k1, k2, k3 = jax.random.split(k, 3)
            gamma = 1.0 + 0.1 * jax.random.normal(k1, (out_channels,), jnp.float32)
            beta = 0.1 * jax.random.normal(k2, (out_channels,), jnp.float32)
            mean = 0.05 * jax.random.normal(k3, (out_channels,), jnp.float32)
            var = jnp.ones((out_channels,), jnp.float32)
            return gamma, beta, mean, var

        self.w1 = conv_w(keys[0], out_channels, in_channels, 3)
        self.bn1 = bn_params(keys[1])
        self.w2 = conv_w(keys[2], out_channels, out_channels, 3)
        self.bn2 = bn_params(keys[3])
        if down_sample and not zero_padding:
            self.w1x1 = conv_w(keys[4], out_channels, in_channels, 1)
            self.bn1x1 = bn_params(keys[5])

        self._fold_params()
        self._forward = jax.jit(self._forward_impl)

    # -- host-side prep: fold BN into weights, build per-tap GEMM matrices ---
    def _fold_params(self):
        s, cin, cout = self.stride, self.in_channels, self.out_channels
        dt = self.mxu_dtype

        def fold(w, bn):
            gamma, beta, mean, var = bn
            scale = gamma / jnp.sqrt(var + _BN_EPS)
            w_folded = w * scale[:, None, None, None]        # (Cout,Cin,kh,kw)
            bias = (beta - mean * scale).reshape(1, cout).astype(jnp.float32)
            return w_folded, bias

        w1f, self.b1 = fold(self.w1, self.bn1)
        w2f, self.b2 = fold(self.w2, self.bn2)

        # conv2 (stride 1): 9 taps of (Cout, Cout)
        self.w2_taps = jnp.stack(
            [w2f[:, :, dh, dw].T for dh in range(3) for dw in range(3)]).astype(dt)
        self.offs2 = tuple((dh, dw) for dh in range(3) for dw in range(3))

        # conv1: stride 1 -> 9 taps (Cin, Cout);
        #        stride 2 -> 4 phase-grouped taps (4*Cin, Cout) matching the
        #        even/odd phase packing done in the wrapper (no strided loads
        #        needed inside the kernel).
        if s == 1:
            self.w1_taps = jnp.stack(
                [w1f[:, :, dh, dw].T for dh in range(3) for dw in range(3)]).astype(dt)
            self.offs1 = tuple((dh, dw) for dh in range(3) for dw in range(3))
        else:
            taps, offs = [], []
            for a0 in (0, 1):
                for b0 in (0, 1):
                    blocks = []
                    for i in (0, 1):
                        for j in (0, 1):
                            dh, dw = 2 * a0 + i, 2 * b0 + j
                            if dh < 3 and dw < 3:
                                blocks.append(w1f[:, :, dh, dw].T)
                            else:
                                blocks.append(jnp.zeros((cin, cout), jnp.float32))
                    taps.append(jnp.concatenate(blocks, axis=0))   # (4*Cin, Cout)
                    offs.append((a0, b0))
            self.w1_taps = jnp.stack(taps).astype(dt)
            self.offs1 = tuple(offs)

        # 1x1-conv + BN shortcut folded into one extra tap matmul
        self.off_sc = (1, 1) if s == 1 else (0, 0)
        if self.down_sample and not self.zero_padding:
            wscf, self.bsc = fold(self.w1x1, self.bn1x1)
            wsc = wscf[:, :, 0, 0].T                              # (Cin, Cout)
            if s == 1:
                self.wsc = wsc.astype(dt)
            else:  # only phase (1,1) (= x[2h, 2w]) contributes
                self.wsc = jnp.concatenate(
                    [jnp.zeros((cin, cout), jnp.float32)] * 3 + [wsc],
                    axis=0).astype(dt)

    # ------------------------------ forward ---------------------------------
    def _forward_impl(self, x_nchw):
        n, cin, h, w = x_nchw.shape
        cout = self.out_channels
        s = self.stride
        x = jnp.transpose(x_nchw, (0, 2, 3, 1)).astype(jnp.float32)   # NHWC

        ho = (h + 2 - 3) // s + 1
        wo = (w + 2 - 3) // s + 1
        if wo % 8 != 0:
            # TODO(synk): pad W inside the kernel for non-multiple-of-8 widths
            raise NotImplementedError("conv output width must be a multiple of 8")
        m = ho * wo

        # -------- shortcut operands (from the exact f32 input) --------
        if not self.down_sample:
            if s != 1 or cin != cout:
                raise ValueError("identity shortcut needs stride==1, cin==cout")
            mode, extras, extra_specs = "id", [], []
        elif self.zero_padding:
            mode = "pool"
            xc = x[:, :(h // 2) * 2, :(w // 2) * 2, :]
            sc = jnp.pad(xc, ((0, 0), (0, 0), (0, 0), (0, cout - cin)))
            sc = sc.reshape(n, h // 2, 2, w // 2, 2, cout).max(axis=(2, 4))
            sc = sc.reshape(n, (h // 2) * (w // 2), cout)
            if sc.shape[1] != m:
                raise ValueError("zero-padding shortcut requires stride == 2")
            extras = [sc]
            extra_specs = [pl.BlockSpec((1, m, cout), lambda i: (i, 0, 0))]
        else:
            mode = "conv1x1"
            extras = [self.wsc, self.bsc]
            extra_specs = [pl.BlockSpec(self.wsc.shape, lambda i: (0, 0)),
                           pl.BlockSpec((1, cout), lambda i: (0, 0))]

        # Hand the conv input to the kernel already in MXU dtype (it is cast
        # before every dot anyway) -> halves HBM input traffic for bf16.
        # Identity-shortcut blocks keep f32 so the residual add stays exact.
        in_dtype = jnp.float32 if mode == "id" else self.mxu_dtype

        x_pad = jnp.pad(x.astype(in_dtype), ((0, 0), (1, 1), (1, 1), (0, 0)))
        if s == 1:
            x_in = x_pad                                   # (n, h+2, w+2, cin)
        else:
            if h % 2 or w % 2:
                raise NotImplementedError("stride-2 path assumes even H, W")
            phases = [x_pad[:, i::2, j::2, :] for i in (0, 1) for j in (0, 1)]
            x_in = jnp.concatenate(phases, axis=-1)        # (n, h//2+1, w//2+1, 4*cin)
        hp, wp, cp1 = x_in.shape[1:]

        kernel = functools.partial(
            _fused_block_kernel,
            offs1=self.offs1, offs2=self.offs2, ho=ho, wo=wo,
            cout=cout, cp1=cp1, mode=mode, off_sc=self.off_sc,
            pad_off=_PAD_OFF, mxu_dtype=self.mxu_dtype)

        in_specs = [
            pl.BlockSpec((1, hp, wp, cp1), lambda i: (i, 0, 0, 0)),
            pl.BlockSpec(self.w1_taps.shape, lambda i: (0, 0, 0)),
            pl.BlockSpec((1, cout), lambda i: (0, 0)),
            pl.BlockSpec(self.w2_taps.shape, lambda i: (0, 0, 0)),
            pl.BlockSpec((1, cout), lambda i: (0, 0)),
        ] + extra_specs

        out = pl.pallas_call(
            kernel,
            out_shape=jax.ShapeDtypeStruct((n, m, cout), jnp.float32),
            grid=(n,),                                    # batch-parallel grid
            in_specs=in_specs,
            out_specs=pl.BlockSpec((1, m, cout), lambda i: (i, 0, 0)),
            scratch_shapes=[pltpu.VMEM((ho + 2, wo + _PAD_OFF + 1, cout),
                                       self.mxu_dtype)],
            compiler_params=pltpu.CompilerParams(
                dimension_semantics=("parallel",),
                vmem_limit_bytes=32 * 1024 * 1024),
        )(x_in, self.w1_taps, self.b1, self.w2_taps, self.b2, *extras)

        # (n, Ho*Wo, Cout) -> NCHW (PyTorch convention)
        return jnp.transpose(out.reshape(n, ho, wo, cout), (0, 3, 1, 2))

    def __call__(self, x_nchw):
        return self._forward(x_nchw)


# ------------------------- pure-JAX reference (XLA) -------------------------

def _ref_conv_bn(x_nhwc, w_oihw, bn, stride, pad):
    gamma, beta, mean, var = bn
    y = jax.lax.conv_general_dilated(
        x_nhwc, jnp.transpose(w_oihw, (2, 3, 1, 0)),
        window_strides=(stride, stride),
        padding=((pad, pad), (pad, pad)),
        dimension_numbers=("NHWC", "HWIO", "NHWC"))
    scale = gamma / jnp.sqrt(var + _BN_EPS)
    return y * scale + (beta - mean * scale)


def _reference_block(block, x_nchw):
    x = jnp.transpose(x_nchw, (0, 2, 3, 1)).astype(jnp.float32)
    n, h, w, cin = x.shape
    cout = block.out_channels
    if block.down_sample:
        if block.zero_padding:
            sc = jnp.pad(x, ((0, 0), (0, 0), (0, 0), (0, cout - cin)))
            sc = sc[:, :(h // 2) * 2, :(w // 2) * 2, :]
            sc = sc.reshape(n, h // 2, 2, w // 2, 2, cout).max(axis=(2, 4))
        else:
            sc = _ref_conv_bn(x, block.w1x1, block.bn1x1, block.stride, 0)
    else:
        sc = x
    o = jnp.maximum(_ref_conv_bn(x, block.w1, block.bn1, block.stride, 1), 0.0)
    o = _ref_conv_bn(o, block.w2, block.bn2, 1, 1)
    o = jnp.maximum(o + sc, 0.0)
    return jnp.transpose(o, (0, 3, 1, 2))


# ----------------------------------- main -----------------------------------

if __name__ == "__main__":
    key = jax.random.PRNGKey(0)
    kx, kp1, kp2, kp3 = jax.random.split(key, 4)

    # Inputs follow the PyTorch NCHW convention.
    x = jax.random.normal(kx, (2, 4, 16, 16), jnp.float32)

    # A: down-sample via 1x1 conv + BN shortcut, stride 2, 4 -> 8 channels.
    blk_a = ResidualBlockPallas(4, 8, 2, True, False, kp1)
    ya = blk_a(x)

    # B: down-sample via zero channel padding + 2x2 max-pool shortcut.
    blk_b = ResidualBlockPallas(4, 8, 2, True, True, kp2)
    yb = blk_b(x)

    # C: identity shortcut, stride 1, 8 -> 8 channels (exact f32 MXU path).
    x8 = jax.random.normal(kx, (2, 8, 16, 16), jnp.float32)
    blk_c = ResidualBlockPallas(8, 8, 1, False, False, kp3,
                                mxu_dtype=jnp.float32)
    yc = blk_c(x8)

    jax.block_until_ready((ya, yb, yc))
    assert ya.shape == (2, 8, 8, 8)
    assert yb.shape == (2, 8, 8, 8)
    assert yc.shape == (2, 8, 16, 16)

    # Numerical check vs. the pure-JAX reference (loose tolerance for the
    # bf16-MXU blocks, tighter for the f32 block).
    for blk, xin, y, tol in ((blk_a, x, ya, 1e-1),
                             (blk_b, x, yb, 1e-1),
                             (blk_c, x8, yc, 5e-2)):
        ref = _reference_block(blk, xin)
        err = float(jnp.max(jnp.abs(y - ref)))
        assert err < tol, f"max abs error {err} exceeds {tol}"

    print("KERNEL_OK")
</pallas_src>

<mosaic_0001>
module attributes {stable_mosaic.version = 11 : i64} {
  func.func @_fused_block_kernel(%arg0: i32, %arg1: memref<1x9x9x16xbf16, #tpu.memory_space<vmem>>, %arg2: memref<4x16x8xbf16, #tpu.memory_space<vmem>>, %arg3: memref<1x8xf32, #tpu.memory_space<vmem>>, %arg4: memref<9x8x8xbf16, #tpu.memory_space<vmem>>, %arg5: memref<1x8xf32, #tpu.memory_space<vmem>>, %arg6: memref<16x8xbf16, #tpu.memory_space<vmem>>, %arg7: memref<1x8xf32, #tpu.memory_space<vmem>>, %arg8: memref<1x64x8xf32, #tpu.memory_space<vmem>>, %arg9: memref<10x17x8xbf16, #tpu.memory_space<vmem>>) attributes {dimension_semantics = [#tpu.dimension_semantics<parallel>], iteration_bounds = array<i64: 2>, scalar_prefetch = 0 : i64, scratch_operands = 1 : i64, tpu.core_type = #tpu.core_type<tc>, window_params = [{transform_indices = @transform_0, window_bounds = array<i64: 1, 9, 9, 16>}, {pipeline_mode = #tpu.pipeline_mode<synchronous>, transform_indices = @transform_1, window_bounds = array<i64: 4, 16, 8>}, {pipeline_mode = #tpu.pipeline_mode<synchronous>, transform_indices = @transform_2, window_bounds = array<i64: 1, 8>}, {pipeline_mode = #tpu.pipeline_mode<synchronous>, transform_indices = @transform_3, window_bounds = array<i64: 9, 8, 8>}, {pipeline_mode = #tpu.pipeline_mode<synchronous>, transform_indices = @transform_4, window_bounds = array<i64: 1, 8>}, {pipeline_mode = #tpu.pipeline_mode<synchronous>, transform_indices = @transform_5, window_bounds = array<i64: 16, 8>}, {pipeline_mode = #tpu.pipeline_mode<synchronous>, transform_indices = @transform_6, window_bounds = array<i64: 1, 8>}, {transform_indices = @transform_7, window_bounds = array<i64: 1, 64, 8>}]} {
    %c0 = arith.constant 0 : index
    %c0_0 = arith.constant 0 : index
    %c0_1 = arith.constant 0 : index
    %c0_2 = arith.constant 0 : index
    %0 = vector.load %arg1[%c0, %c0_0, %c0_1, %c0_2] : memref<1x9x9x16xbf16, #tpu.memory_space<vmem>>, vector<1x8x8x16xbf16>
    %1 = vector.shape_cast %0 : vector<1x8x8x16xbf16> to vector<8x8x16xbf16>
    %2 = vector.shape_cast %1 : vector<8x8x16xbf16> to vector<64x16xbf16>
    %c0_3 = arith.constant 0 : index
    %c0_4 = arith.constant 0 : index
    %c0_5 = arith.constant 0 : index
    %3 = vector.load %arg2[%c0_3, %c0_4, %c0_5] : memref<4x16x8xbf16, #tpu.memory_space<vmem>>, vector<1x16x8xbf16>
    %4 = vector.shape_cast %3 : vector<1x16x8xbf16> to vector<16x8xbf16>
    %cst = arith.constant dense<0.000000e+00> : vector<64x8xf32>
    %5 = tpu.matmul %2, %4, %cst {dimension_numbers = #tpu.dot_dimension_numbers<[1], [0], [0], [1], [0, 0, 1, 1], [], []>} : vector<64x16xbf16>, vector<16x8xbf16>, vector<64x8xf32> -> vector<64x8xf32>
    %c0_6 = arith.constant 0 : index
    %c0_7 = arith.constant 0 : index
    %c1 = arith.constant 1 : index
    %c0_8 = arith.constant 0 : index
    %6 = vector.load %arg1[%c0_6, %c0_7, %c1, %c0_8] : memref<1x9x9x16xbf16, #tpu.memory_space<vmem>>, vector<1x8x8x16xbf16>
    %7 = vector.shape_cast %6 : vector<1x8x8x16xbf16> to vector<8x8x16xbf16>
    %8 = vector.shape_cast %7 : vector<8x8x16xbf16> to vector<64x16xbf16>
    %c1_9 = arith.constant 1 : index
    %c0_10 = arith.constant 0 : index
    %c0_11 = arith.constant 0 : index
    %9 = vector.load %arg2[%c1_9, %c0_10, %c0_11] : memref<4x16x8xbf16, #tpu.memory_space<vmem>>, vector<1x16x8xbf16>
    %10 = vector.shape_cast %9 : vector<1x16x8xbf16> to vector<16x8xbf16>
    %cst_12 = arith.constant dense<0.000000e+00> : vector<64x8xf32>
    %11 = tpu.matmul %8, %10, %cst_12 {dimension_numbers = #tpu.dot_dimension_numbers<[1], [0], [0], [1], [0, 0, 1, 1], [], []>} : vector<64x16xbf16>, vector<16x8xbf16>, vector<64x8xf32> -> vector<64x8xf32>
    %12 = arith.addf %5, %11 : vector<64x8xf32>
    %c0_13 = arith.constant 0 : index
    %c1_14 = arith.constant 1 : index
    %c0_15 = arith.constant 0 : index
    %c0_16 = arith.constant 0 : index
    %13 = vector.load %arg1[%c0_13, %c1_14, %c0_15, %c0_16] : memref<1x9x9x16xbf16, #tpu.memory_space<vmem>>, vector<1x8x8x16xbf16>
    %14 = vector.shape_cast %13 : vector<1x8x8x16xbf16> to vector<8x8x16xbf16>
    %15 = vector.shape_cast %14 : vector<8x8x16xbf16> to vector<64x16xbf16>
    %c2 = arith.constant 2 : index
    %c0_17 = arith.constant 0 : index
    %c0_18 = arith.constant 0 : index
    %16 = vector.load %arg2[%c2, %c0_17, %c0_18] : memref<4x16x8xbf16, #tpu.memory_space<vmem>>, vector<1x16x8xbf16>
    %17 = vector.shape_cast %16 : vector<1x16x8xbf16> to vector<16x8xbf16>
    %cst_19 = arith.constant dense<0.000000e+00> : vector<64x8xf32>
    %18 = tpu.matmul %15, %17, %cst_19 {dimension_numbers = #tpu.dot_dimension_numbers<[1], [0], [0], [1], [0, 0, 1, 1], [], []>} : vector<64x16xbf16>, vector<16x8xbf16>, vector<64x8xf32> -> vector<64x8xf32>
    %19 = arith.addf %12, %18 : vector<64x8xf32>
    %c0_20 = arith.constant 0 : index
    %c1_21 = arith.constant 1 : index
    %c1_22 = arith.constant 1 : index
    %c0_23 = arith.constant 0 : index
    %20 = vector.load %arg1[%c0_20, %c1_21, %c1_22, %c0_23] : memref<1x9x9x16xbf16, #tpu.memory_space<vmem>>, vector<1x8x8x16xbf16>
    %21 = vector.shape_cast %20 : vector<1x8x8x16xbf16> to vector<8x8x16xbf16>
    %22 = vector.shape_cast %21 : vector<8x8x16xbf16> to vector<64x16xbf16>
    %c3 = arith.constant 3 : index
    %c0_24 = arith.constant 0 : index
    %c0_25 = arith.constant 0 : index
    %23 = vector.load %arg2[%c3, %c0_24, %c0_25] : memref<4x16x8xbf16, #tpu.memory_space<vmem>>, vector<1x16x8xbf16>
    %24 = vector.shape_cast %23 : vector<1x16x8xbf16> to vector<16x8xbf16>
    %cst_26 = arith.constant dense<0.000000e+00> : vector<64x8xf32>
    %25 = tpu.matmul %22, %24, %cst_26 {dimension_numbers = #tpu.dot_dimension_numbers<[1], [0], [0], [1], [0, 0, 1, 1], [], []>} : vector<64x16xbf16>, vector<16x8xbf16>, vector<64x8xf32> -> vector<64x8xf32>
    %26 = arith.addf %19, %25 : vector<64x8xf32>
    %c0_27 = arith.constant 0 : index
    %c0_28 = arith.constant 0 : index
    %27 = vector.load %arg3[%c0_27, %c0_28] : memref<1x8xf32, #tpu.memory_space<vmem>>, vector<1x8xf32>
    %28 = vector.broadcast %27 : vector<1x8xf32> to vector<64x8xf32>
    %29 = arith.addf %26, %28 : vector<64x8xf32>
    %cst_29 = arith.constant 0.000000e+00 : f32
    %30 = vector.broadcast %cst_29 : f32 to vector<64x8xf32>
    %31 = arith.maximumf %29, %30 : vector<64x8xf32>
    %cst_30 = arith.constant 0.000000e+00 : bf16
    %32 = vector.broadcast %cst_30 : bf16 to vector<10x17x8xbf16>
    %c0_31 = arith.constant 0 : index
    %c0_32 = arith.constant 0 : index
    %c0_33 = arith.constant 0 : index
    %33 = vector.load %arg9[%c0_31, %c0_32, %c0_33] : memref<10x17x8xbf16, #tpu.memory_space<vmem>>, vector<10x17x8xbf16>
    tpu.vector_store %arg9[%c0_31, %c0_32, %c0_33], %32 {strides = array<i32>} : memref<10x17x8xbf16, #tpu.memory_space<vmem>>, vector<10x17x8xbf16>,
    %34 = vector.shape_cast %31 : vector<64x8xf32> to vector<8x8x8xf32>
    %35 = arith.truncf %34 : vector<8x8x8xf32> to vector<8x8x8xbf16>
    %c1_34 = arith.constant 1 : index
    %c8 = arith.constant 8 : index
    %c0_35 = arith.constant 0 : index
    %36 = vector.load %arg9[%c1_34, %c8, %c0_35] : memref<10x17x8xbf16, #tpu.memory_space<vmem>>, vector<8x8x8xbf16>
    tpu.vector_store %arg9[%c1_34, %c8, %c0_35], %35 {strides = array<i32>} : memref<10x17x8xbf16, #tpu.memory_space<vmem>>, vector<8x8x8xbf16>,
    %c0_36 = arith.constant 0 : index
    %c7 = arith.constant 7 : index
    %c0_37 = arith.constant 0 : index
    %37 = vector.load %arg9[%c0_36, %c7, %c0_37] : memref<10x17x8xbf16, #tpu.memory_space<vmem>>, vector<8x8x8xbf16>
    %38 = vector.shape_cast %37 : vector<8x8x8xbf16> to vector<64x8xbf16>
    %c0_38 = arith.constant 0 : index
    %c0_39 = arith.constant 0 : index
    %c0_40 = arith.constant 0 : index
    %39 = vector.load %arg4[%c0_38, %c0_39, %c0_40] : memref<9x8x8xbf16, #tpu.memory_space<vmem>>, vector<1x8x8xbf16>
    %40 = vector.shape_cast %39 : vector<1x8x8xbf16> to vector<8x8xbf16>
    %cst_41 = arith.constant dense<0.000000e+00> : vector<64x8xf32>
    %41 = tpu.matmul %38, %40, %cst_41 {dimension_numbers = #tpu.dot_dimension_numbers<[1], [0], [0], [1], [0, 0, 1, 1], [], []>} : vector<64x8xbf16>, vector<8x8xbf16>, vector<64x8xf32> -> vector<64x8xf32>
    %c0_42 = arith.constant 0 : index
    %c8_43 = arith.constant 8 : index
    %c0_44 = arith.constant 0 : index
    %42 = vector.load %arg9[%c0_42, %c8_43, %c0_44] : memref<10x17x8xbf16, #tpu.memory_space<vmem>>, vector<8x8x8xbf16>
    %43 = vector.shape_cast %42 : vector<8x8x8xbf16> to vector<64x8xbf16>
    %c1_45 = arith.constant 1 : index
    %c0_46 = arith.constant 0 : index
    %c0_47 = arith.constant 0 : index
    %44 = vector.load %arg4[%c1_45, %c0_46, %c0_47] : memref<9x8x8xbf16, #tpu.memory_space<vmem>>, vector<1x8x8xbf16>
    %45 = vector.shape_cast %44 : vector<1x8x8xbf16> to vector<8x8xbf16>
    %cst_48 = arith.constant dense<0.000000e+00> : vector<64x8xf32>
    %46 = tpu.matmul %43, %45, %cst_48 {dimension_numbers = #tpu.dot_dimension_numbers<[1], [0], [0], [1], [0, 0, 1, 1], [], []>} : vector<64x8xbf16>, vector<8x8xbf16>, vector<64x8xf32> -> vector<64x8xf32>
    %47 = arith.addf %41, %46 : vector<64x8xf32>
    %c0_49 = arith.constant 0 : index
    %c9 = arith.constant 9 : index
    %c0_50 = arith.constant 0 : index
    %48 = vector.load %arg9[%c0_49, %c9, %c0_50] : memref<10x17x8xbf16, #tpu.memory_space<vmem>>, vector<8x8x8xbf16>
    %49 = vector.shape_cast %48 : vector<8x8x8xbf16> to vector<64x8xbf16>
    %c2_51 = arith.constant 2 : index
    %c0_52 = arith.constant 0 : index
    %c0_53 = arith.constant 0 : index
    %50 = vector.load %arg4[%c2_51, %c0_52, %c0_53] : memref<9x8x8xbf16, #tpu.memory_space<vmem>>, vector<1x8x8xbf16>
    %51 = vector.shape_cast %50 : vector<1x8x8xbf16> to vector<8x8xbf16>
    %cst_54 = arith.constant dense<0.000000e+00> : vector<64x8xf32>
    %52 = tpu.matmul %49, %51, %cst_54 {dimension_numbers = #tpu.dot_dimension_numbers<[1], [0], [0], [1], [0, 0, 1, 1], [], []>} : vector<64x8xbf16>, vector<8x8xbf16>, vector<64x8xf32> -> vector<64x8xf32>
    %53 = arith.addf %47, %52 : vector<64x8xf32>
    %c1_55 = arith.constant 1 : index
    %c7_56 = arith.constant 7 : index
    %c0_57 = arith.constant 0 : index
    %54 = vector.load %arg9[%c1_55, %c7_56, %c0_57] : memref<10x17x8xbf16, #tpu.memory_space<vmem>>, vector<8x8x8xbf16>
    %55 = vector.shape_cast %54 : vector<8x8x8xbf16> to vector<64x8xbf16>
    %c3_58 = arith.constant 3 : index
    %c0_59 = arith.constant 0 : index
    %c0_60 = arith.constant 0 : index
    %56 = vector.load %arg4[%c3_58, %c0_59, %c0_60] : memref<9x8x8xbf16, #tpu.memory_space<vmem>>, vector<1x8x8xbf16>
    %57 = vector.shape_cast %56 : vector<1x8x8xbf16> to vector<8x8xbf16>
    %cst_61 = arith.constant dense<0.000000e+00> : vector<64x8xf32>
    %58 = tpu.matmul %55, %57, %cst_61 {dimension_numbers = #tpu.dot_dimension_numbers<[1], [0], [0], [1], [0, 0, 1, 1], [], []>} : vector<64x8xbf16>, vector<8x8xbf16>, vector<64x8xf32> -> vector<64x8xf32>
    %59 = arith.addf %53, %58 : vector<64x8xf32>
    %c1_62 = arith.constant 1 : index
    %c8_63 = arith.constant 8 : index
    %c0_64 = arith.constant 0 : index
    %60 = vector.load %arg9[%c1_62, %c8_63, %c0_64] : memref<10x17x8xbf16, #tpu.memory_space<vmem>>, vector<8x8x8xbf16>
    %61 = vector.shape_cast %60 : vector<8x8x8xbf16> to vector<64x8xbf16>
    %c4 = arith.constant 4 : index
    %c0_65 = arith.constant 0 : index
    %c0_66 = arith.constant 0 : index
    %62 = vector.load %arg4[%c4, %c0_65, %c0_66] : memref<9x8x8xbf16, #tpu.memory_space<vmem>>, vector<1x8x8xbf16>
    %63 = vector.shape_cast %62 : vector<1x8x8xbf16> to vector<8x8xbf16>
    %cst_67 = arith.constant dense<0.000000e+00> : vector<64x8xf32>
    %64 = tpu.matmul %61, %63, %cst_67 {dimension_numbers = #tpu.dot_dimension_numbers<[1], [0], [0], [1], [0, 0, 1, 1], [], []>} : vector<64x8xbf16>, vector<8x8xbf16>, vector<64x8xf32> -> vector<64x8xf32>
    %65 = arith.addf %59, %64 : vector<64x8xf32>
    %c1_68 = arith.constant 1 : index
    %c9_69 = arith.constant 9 : index
    %c0_70 = arith.constant 0 : index
    %66 = vector.load %arg9[%c1_68, %c9_69, %c0_70] : memref<10x17x8xbf16, #tpu.memory_space<vmem>>, vector<8x8x8xbf16>
    %67 = vector.shape_cast %66 : vector<8x8x8xbf16> to vector<64x8xbf16>
    %c5 = arith.constant 5 : index
    %c0_71 = arith.constant 0 : index
    %c0_72 = arith.constant 0 : index
    %68 = vector.load %arg4[%c5, %c0_71, %c0_72] : memref<9x8x8xbf16, #tpu.memory_space<vmem>>, vector<1x8x8xbf16>
    %69 = vector.shape_cast %68 : vector<1x8x8xbf16> to vector<8x8xbf16>
    %cst_73 = arith.constant dense<0.000000e+00> : vector<64x8xf32>
    %70 = tpu.matmul %67, %69, %cst_73 {dimension_numbers = #tpu.dot_dimension_numbers<[1], [0], [0], [1], [0, 0, 1, 1], [], []>} : vector<64x8xbf16>, vector<8x8xbf16>, vector<64x8xf32> -> vector<64x8xf32>
    %71 = arith.addf %65, %70 : vector<64x8xf32>
    %c2_74 = arith.constant 2 : index
    %c7_75 = arith.constant 7 : index
    %c0_76 = arith.constant 0 : index
    %72 = vector.load %arg9[%c2_74, %c7_75, %c0_76] : memref<10x17x8xbf16, #tpu.memory_space<vmem>>, vector<8x8x8xbf16>
    %73 = vector.shape_cast %72 : vector<8x8x8xbf16> to vector<64x8xbf16>
    %c6 = arith.constant 6 : index
    %c0_77 = arith.constant 0 : index
    %c0_78 = arith.constant 0 : index
    %74 = vector.load %arg4[%c6, %c0_77, %c0_78] : memref<9x8x8xbf16, #tpu.memory_space<vmem>>, vector<1x8x8xbf16>
    %75 = vector.shape_cast %74 : vector<1x8x8xbf16> to vector<8x8xbf16>
    %cst_79 = arith.constant dense<0.000000e+00> : vector<64x8xf32>
    %76 = tpu.matmul %73, %75, %cst_79 {dimension_numbers = #tpu.dot_dimension_numbers<[1], [0], [0], [1], [0, 0, 1, 1], [], []>} : vector<64x8xbf16>, vector<8x8xbf16>, vector<64x8xf32> -> vector<64x8xf32>
    %77 = arith.addf %71, %76 : vector<64x8xf32>
    %c2_80 = arith.constant 2 : index
    %c8_81 = arith.constant 8 : index
    %c0_82 = arith.constant 0 : index
    %78 = vector.load %arg9[%c2_80, %c8_81, %c0_82] : memref<10x17x8xbf16, #tpu.memory_space<vmem>>, vector<8x8x8xbf16>
    %79 = vector.shape_cast %78 : vector<8x8x8xbf16> to vector<64x8xbf16>
    %c7_83 = arith.constant 7 : index
    %c0_84 = arith.constant 0 : index
    %c0_85 = arith.constant 0 : index
    %80 = vector.load %arg4[%c7_83, %c0_84, %c0_85] : memref<9x8x8xbf16, #tpu.memory_space<vmem>>, vector<1x8x8xbf16>
    %81 = vector.shape_cast %80 : vector<1x8x8xbf16> to vector<8x8xbf16>
    %cst_86 = arith.constant dense<0.000000e+00> : vector<64x8xf32>
    %82 = tpu.matmul %79, %81, %cst_86 {dimension_numbers = #tpu.dot_dimension_numbers<[1], [0], [0], [1], [0, 0, 1, 1], [], []>} : vector<64x8xbf16>, vector<8x8xbf16>, vector<64x8xf32> -> vector<64x8xf32>
    %83 = arith.addf %77, %82 : vector<64x8xf32>
    %c2_87 = arith.constant 2 : index
    %c9_88 = arith.constant 9 : index
    %c0_89 = arith.constant 0 : index
    %84 = vector.load %arg9[%c2_87, %c9_88, %c0_89] : memref<10x17x8xbf16, #tpu.memory_space<vmem>>, vector<8x8x8xbf16>
    %85 = vector.shape_cast %84 : vector<8x8x8xbf16> to vector<64x8xbf16>
    %c8_90 = arith.constant 8 : index
    %c0_91 = arith.constant 0 : index
    %c0_92 = arith.constant 0 : index
    %86 = vector.load %arg4[%c8_90, %c0_91, %c0_92] : memref<9x8x8xbf16, #tpu.memory_space<vmem>>, vector<1x8x8xbf16>
    %87 = vector.shape_cast %86 : vector<1x8x8xbf16> to vector<8x8xbf16>
    %cst_93 = arith.constant dense<0.000000e+00> : vector<64x8xf32>
    %88 = tpu.matmul %85, %87, %cst_93 {dimension_numbers = #tpu.dot_dimension_numbers<[1], [0], [0], [1], [0, 0, 1, 1], [], []>} : vector<64x8xbf16>, vector<8x8xbf16>, vector<64x8xf32> -> vector<64x8xf32>
    %89 = arith.addf %83, %88 : vector<64x8xf32>
    %c0_94 = arith.constant 0 : index
    %c0_95 = arith.constant 0 : index
    %90 = vector.load %arg5[%c0_94, %c0_95] : memref<1x8xf32, #tpu.memory_space<vmem>>, vector<1x8xf32>
    %91 = vector.broadcast %90 : vector<1x8xf32> to vector<64x8xf32>
    %92 = arith.addf %89, %91 : vector<64x8xf32>
    %c0_96 = arith.constant 0 : index
    %c0_97 = arith.constant 0 : index
    %93 = vector.load %arg6[%c0_96, %c0_97] : memref<16x8xbf16, #tpu.memory_space<vmem>>, vector<16x8xbf16>
    %cst_98 = arith.constant dense<0.000000e+00> : vector<64x8xf32>
    %94 = tpu.matmul %2, %93, %cst_98 {dimension_numbers = #tpu.dot_dimension_numbers<[1], [0], [0], [1], [0, 0, 1, 1], [], []>} : vector<64x16xbf16>, vector<16x8xbf16>, vector<64x8xf32> -> vector<64x8xf32>
    %c0_99 = arith.constant 0 : index
    %c0_100 = arith.constant 0 : index
    %95 = vector.load %arg7[%c0_99, %c0_100] : memref<1x8xf32, #tpu.memory_space<vmem>>, vector<1x8xf32>
    %96 = vector.broadcast %95 : vector<1x8xf32> to vector<64x8xf32>
    %97 = arith.addf %94, %96 : vector<64x8xf32>
    %98 = arith.addf %92, %97 : vector<64x8xf32>
    %cst_101 = arith.constant 0.000000e+00 : f32
    %99 = vector.broadcast %cst_101 : f32 to vector<64x8xf32>
    %100 = arith.maximumf %98, %99 : vector<64x8xf32>
    %c0_102 = arith.constant 0 : index
    %c0_103 = arith.constant 0 : index
    %c0_104 = arith.constant 0 : index
    %101 = vector.load %arg8[%c0_102, %c0_103, %c0_104] : memref<1x64x8xf32, #tpu.memory_space<vmem>>, vector<1x64x8xf32>
    %102 = vector.shape_cast %101 : vector<1x64x8xf32> to vector<64x8xf32>
    %103 = vector.shape_cast %100 : vector<64x8xf32> to vector<1x64x8xf32>
    tpu.vector_store %arg8[%c0_102, %c0_103, %c0_104], %103 {strides = array<i32>} : memref<1x64x8xf32, #tpu.memory_space<vmem>>, vector<1x64x8xf32>,
    return
  }
  func.func @transform_0(%arg0: i32) -> (i32, i32, i32, i32) {
    %c0_i32 = arith.constant 0 : i32
    %c0_i32_0 = arith.constant 0 : i32
    %c0_i32_1 = arith.constant 0 : i32
    %c0_i32_2 = arith.constant 0 : i32
    return %arg0, %c0_i32, %c0_i32_0, %c0_i32_1 : i32, i32, i32, i32
  }
  func.func @transform_1(%arg0: i32) -> (i32, i32, i32) {
    %c0_i32 = arith.constant 0 : i32
    %c0_i32_0 = arith.constant 0 : i32
    %c0_i32_1 = arith.constant 0 : i32
    %c0_i32_2 = arith.constant 0 : i32
    return %c0_i32, %c0_i32_0, %c0_i32_1 : i32, i32, i32
  }
  func.func @transform_2(%arg0: i32) -> (i32, i32) {
    %c0_i32 = arith.constant 0 : i32
    %c0_i32_0 = arith.constant 0 : i32
    %c0_i32_1 = arith.constant 0 : i32
    return %c0_i32, %c0_i32_0 : i32, i32
  }
  func.func @transform_3(%arg0: i32) -> (i32, i32, i32) {
    %c0_i32 = arith.constant 0 : i32
    %c0_i32_0 = arith.constant 0 : i32
    %c0_i32_1 = arith.constant 0 : i32
    %c0_i32_2 = arith.constant 0 : i32
    return %c0_i32, %c0_i32_0, %c0_i32_1 : i32, i32, i32
  }
  func.func @transform_4(%arg0: i32) -> (i32, i32) {
    %c0_i32 = arith.constant 0 : i32
    %c0_i32_0 = arith.constant 0 : i32
    %c0_i32_1 = arith.constant 0 : i32
    return %c0_i32, %c0_i32_0 : i32, i32
  }
  func.func @transform_5(%arg0: i32) -> (i32, i32) {
    %c0_i32 = arith.constant 0 : i32
    %c0_i32_0 = arith.constant 0 : i32
    %c0_i32_1 = arith.constant 0 : i32
    return %c0_i32, %c0_i32_0 : i32, i32
  }
  func.func @transform_6(%arg0: i32) -> (i32, i32) {
    %c0_i32 = arith.constant 0 : i32
    %c0_i32_0 = arith.constant 0 : i32
    %c0_i32_1 = arith.constant 0 : i32
    return %c0_i32, %c0_i32_0 : i32, i32
  }
  func.func @transform_7(%arg0: i32) -> (i32, i32, i32) {
    %c0_i32 = arith.constant 0 : i32
    %c0_i32_0 = arith.constant 0 : i32
    %c0_i32_1 = arith.constant 0 : i32
    return %arg0, %c0_i32, %c0_i32_0 : i32, i32, i32
  }
}

</mosaic_0001>

<bundles_post_ra>
// kernel: _forward_impl.1
= control target key start
LH: loop header
LB: loop body
LE: loop exit
PB: predicated region body
PF: predicated region fallthrough
CT: control target
= control target key end

     0   :  { %s3407_s24 = smov 0   ;;  %s4265_s0 = inlined_call_operand.vmem [shape: bf16[2,9,9,16], index: 0, kind: input, shape index: {}]   ;;  %s4266_s1 = inlined_call_operand.vmem [shape: bf16[4,16,8], index: 1, kind: input, shape index: {}]   ;;  %s4267_s2 = inlined_call_operand.vmem [shape: f32[1,8], index: 2, kind: input, shape index: {}]   ;;  %s4268_s3 = inlined_call_operand.vmem [shape: bf16[9,8,8], index: 3, kind: input, shape index: {}]   ;;  %s4269_s4 = inlined_call_operand.vmem [shape: f32[1,8], index: 4, kind: input, shape index: {}]   ;;  %s4270_s5 = inlined_call_operand.vmem [shape: bf16[16,8], index: 5, kind: input, shape index: {}]   ;;  %s4271_s6 = inlined_call_operand.vmem [shape: f32[1,8], index: 6, kind: input, shape index: {}]   ;;  %s4272_s7 = inlined_call_operand.vmem [shape: f32[2,64,8], index: 7, kind: output, shape index: {}]  }
   0x1 LB: > { %s2914_s25 = sadd.s32 4294967295, %s3364_s24   ;;  %p2918_p0 = scmp.ge.s32.totalorder %s3364_s24, 1  ;;  %s3364_s24 = sphi %s3407_s24, %s17_s24  }
   0x2   : > { %p237_p1 = scmp.lt.s32.totalorder %s3364_s24, 3 }
   0x4   : > { %p238_p2 = pnand %p2918_p0, %p237_p1 }
   0x6   : > { %241 = sbr.rel (%p238_p2) target bundleno = 564 (0x234), region = 48 }
   0xb   : > { %v3332_v0 = vld [vmem:[%s4266_s1] sm:$0xff]   ;;  %p269_p3 = scmp.lt.s32.totalorder %s2914_s25, 1  ;;  %v3333_v1 = vld [vmem:[%s4266_s1 + $0x8] sm:$0xff]   ;;  %v3426_v2 = vld [vmem:[%s4266_s1 + $0x10] sm:$0xff]   ;;  %vm434_vm0 = vcmask 130048   ;;  %vm995_vm4 = vcmask 60416  }
   0xc   : > { %3183 = vmatprep.subr.bf16.mxu1 %v3332_v0  ;;  %3173 = vmatprep.subr.bf16.mxu0 %v3333_v1  ;;  %v3337_v3 = vld [vmem:[%s4266_s1 + $0x18] sm:$0xff]   ;;  %vm298_vm1 = vsmask.f32 3328  ;;  %vm299_vm2 = vsmask.f32 7440  ;;  %vm998_vm6 = vcmask 57344  }
   0xd   : > { %s4368_s25 = smov (!%p269_p3, %s2914_s25), 1  ;;  %3184 = vmatpush3.bf16.msra.mxu1 %v3332_v0  ;;  %3174 = vmatpush3.bf16.msra.mxu0 %v3333_v1  ;;  %vm3454_vm3 = vmor %vm298_vm1, %vm299_vm2  ;;  %vm999_vm5 = vsmask.f32 256  ;;  %vm1224_vm8 = vcmask 1043456   ;;  %vm1082_vm9 = vsmask.f32 4368 }
   0xe   : > { %s3322_s9 = smul.u32 72, %s4368_s25  ;;  %3193 = vmatprep.subr.bf16.mxu0 %v3426_v2  ;;  %3203 = vmatprep.subr.bf16.mxu1 %v3337_v3  ;;  %vm3562_vm7 = vmand %vm998_vm6, %vm999_vm5  ;;  %vm1211_vm11 = vcmask 64512   ;;  %s3102_s20 = sshll.u32 %s4368_s25, 6 }
   0xf   : > { %vm3763_vm10 = vmor %vm999_vm5, %vm1082_vm9  ;;  %s4231_s22 = scalar_lea.vmem %s4272_s7, %s3102_s20 }
  0x10   : > { %s3436_s14 = scalar_lea.vmem %s4265_s0, %s3322_s9 }
  0x11   : > { %v280_v4 = vld [vmem:[%s3436_s14] sm:$0xf]  ;;  %v281_v5 = vld [vmem:[%s3436_s14 + $0x8] sm:$0xf]  ;;  %v282_v6 = vld [vmem:[%s3436_s14 + $0x10] sm:$0xf] }
  0x12   : > { %v302_v7 = vshrl.u32 %v280_v4, 16  ;;  %v305_v8 = vshll.u32 %v280_v4, 16  ;;  %v316_v9 = vshrl.u32 %v281_v5, 16  ;;  %v319_v10 = vshll.u32 %v281_v5, 16  ;;  %v283_v11 = vld [vmem:[%s3436_s14 + $0x18] sm:$0xf] }
  0x13   : > { %v3442_v12 = vcombine.low %v280_v4, %v281_v5  ;;  %v330_v13 = vshrl.u32 %v282_v6, 16  ;;  %v333_v14 = vshll.u32 %v282_v6, 16  ;;  %v344_v15 = vshrl.u32 %v283_v11, 16  ;;  %v290_v16 = vld [vmem:[%s3436_s14 + $0x4] sm:$0x1] }
  0x14   : > { %v304_v17 = vrot.slane %v302_v7, 4  ;;  %v307_v18 = vrot.slane %v305_v8, 5  ;;  %v318_v19 = vrot.slane %v316_v9, 4  ;;  %v321_v20 = vrot.slane %v319_v10, 5  ;;  %v291_v21 = vld [vmem:[%s3436_s14 + $0xc] sm:$0x1] }
  0x15   : > { %4279 = vst [vmem:[#allocation3_spill] sm:$0xff] %v3442_v12  ;;  %3185 = vmatprep.mubr.msk.bf16.mxu1 %vm434_vm0, %v3442_v12  ;;  %v332_v22 = vrot.slane %v330_v13, 4  ;;  %v335_v23 = vrot.slane %v333_v14, 5  ;;  %v346_v24 = vrot.slane %v344_v15, 4  ;;  %v347_v25 = vshll.u32 %v283_v11, 16 }
  0x16   : > { %v292_v26 = vld [vmem:[%s3436_s14 + $0x14] sm:$0x1]  ;;  %v3449_v27 = vcombine.low %v282_v6, %v283_v11  ;;  %v308_v28 = vor.u32 %v307_v18, %v304_v17  ;;  %v311_v29 = vshll.u32 %v290_v16, 16  ;;  %v322_v30 = vor.u32 %v321_v20, %v318_v19  ;;  %v293_v31 = vld [vmem:[%s3436_s14 + $0x1c] sm:$0x1] }
  0x17   : > { %v349_v32 = vrot.slane %v347_v25, 5  ;;  %v325_v34 = vshll.u32 %v291_v21, 16  ;;  %v336_v35 = vor.u32 %v335_v23, %v332_v22  ;;  %v339_v36 = vshll.u32 %v292_v26, 16  ;;  %v284_v37 = vld [vmem:[%s3436_s14 + $0x20] sm:$0xf] }
  0x18   : > { %4280 = vst [vmem:[#allocation4_spill] sm:$0xff] %v3449_v27  ;;  %3186 = vmatmul.mubr.msk.bf16.vlgmr.msra.gmra.mxu1 %vm434_vm0, %v3449_v27  ;;  %v309_v38 = vrot.slane %v308_v28, 4  ;;  %v313_v39 = vrot.slane %v311_v29, 5  ;;  %v323_v40 = vrot.slane %v322_v30, 4  ;;  %v353_v41 = vshll.u32 %v293_v31, 16 }
  0x19   : > { %v285_v42 = vld [vmem:[%s3436_s14 + $0x28] sm:$0xf]  ;;  %v327_v43 = vrot.slane %v325_v34, 5  ;;  %v337_v44 = vrot.slane %v336_v35, 4  ;;  %v341_v45 = vrot.slane %v339_v36, 5  ;;  %v350_v46 = vor.u32 %v349_v32, %v346_v24  ;;  %3204 = vmatpush3.bf16.msra.mxu1 %v3337_v3 }
  0x1a   : > { %v314_v47 = vsel %vm3454_vm3, %v309_v38, %v313_v39  ;;  %v355_v48 = vrot.slane %v353_v41, 5  ;;  %v358_v49 = vshrl.u32 %v284_v37, 16  ;;  %v361_v50 = vshll.u32 %v284_v37, 16  ;;  %v286_v51 = vld [vmem:[%s3436_s14 + $0x30] sm:$0xf] }
  0x1b   : > { %v328_v52 = vsel %vm3454_vm3, %v323_v40, %v327_v43  ;;  %v342_v53 = vsel %vm3454_vm3, %v337_v44, %v341_v45  ;;  %v351_v54 = vrot.slane %v350_v46, 4  ;;  %v372_v55 = vshrl.u32 %v285_v42, 16  ;;  %v287_v56 = vld [vmem:[%s3436_s14 + $0x38] sm:$0xf]  ;;  %v294_v1 = vld [vmem:[%s3436_s14 + $0x24] sm:$0x1] }
  0x1c   : > { %v2924_v57 = vcombine.low %v314_v47, %v328_v52  ;;  %v360_v58 = vrot.slane %v358_v49, 4  ;;  %v363_v59 = vrot.slane %v361_v50, 5  ;;  %v375_v60 = vshll.u32 %v285_v42, 16  ;;  %v295_v3 = vld [vmem:[%s3436_s14 + $0x2c] sm:$0x1] }
  0x1d   : > { %v356_v61 = vsel %vm3454_vm3, %v351_v54, %v355_v48  ;;  %v374_v62 = vrot.slane %v372_v55, 4  ;;  %v3472_v63 = vcombine.low %v284_v37, %v285_v42  ;;  %v386_v0 = vshrl.u32 %v286_v51, 16  ;;  %v296_v8 = vld [vmem:[%s3436_s14 + $0x34] sm:$0x1]  ;;  %v297_v14 = vld [vmem:[%s3436_s14 + $0x3c] sm:$0x1] }
  0x1e   : > { %3175 = vmatprep.mubr.msk.bf16.mxu0 %vm434_vm0, %v2924_v57  ;;  %v2925_v4 = vcombine.low %v342_v53, %v356_v61  ;;  %v377_v5 = vrot.slane %v375_v60, 5  ;;  %v389_v6 = vshll.u32 %v286_v51, 16  ;;  %v400_v7 = vshrl.u32 %v287_v56, 16  ;;  %v2961_v15 = vld [vmem:[%s3436_s14 + $0x8] sm:$0xf] }
  0x1f   : > { %4283 = vst [vmem:[#allocation5_spill] sm:$0xff] %v3472_v63  ;;  %3189 = vmatprep.mubr.msk.bf16.mxu1 %vm434_vm0, %v3472_v63  ;;  %v388_v9 = vrot.slane %v386_v0, 4  ;;  %v403_v10 = vshll.u32 %v287_v56, 16  ;;  %v3480_v11 = vcombine.low %v286_v51, %v287_v56  ;;  %v364_v13 = vor.u32 %v363_v59, %v360_v58  ;;  %v2962_v20 = vld [vmem:[%s3436_s14 + $0xc] sm:$0x1] }
  0x20   : > { %3176 = vmatmul.mubr.msk.bf16.vlgmr.msra.gmra.mxu0 %vm434_vm0, %v2925_v4  ;;  %v391_v16 = vrot.slane %v389_v6, 5  ;;  %v402_v17 = vrot.slane %v400_v7, 4  ;;  %v367_v18 = vshll.u32 %v294_v1, 16  ;;  %v378_v19 = vor.u32 %v377_v5, %v374_v62  ;;  %v2963_v25 = vld [vmem:[%s3436_s14 + $0x10] sm:$0xf] }
  0x21   : > { %4284 = vst [vmem:[#allocation6_spill] sm:$0xff] %v3480_v11  ;;  %3194 = vmatpush3.bf16.msra.mxu0 %v3426_v2  ;;  %v405_v21 = vrot.slane %v403_v10, 5  ;;  %3190 = vmatmul.mubr.msk.bf16.gmra.mxu1 %vm434_vm0, %v3480_v11  ;;  %v365_v22 = vrot.slane %v364_v13, 4  ;;  %v381_v23 = vshll.u32 %v295_v3, 16  ;;  %v395_v24 = vshll.u32 %v296_v8, 16 }
  0x22   : > { %v369_v26 = vrot.slane %v367_v18, 5  ;;  %v379_v28 = vrot.slane %v378_v19, 4  ;;  %v392_v29 = vor.u32 %v391_v16, %v388_v9  ;;  %v409_v30 = vshll.u32 %v297_v14, 16  ;;  %v2964_v31 = vld [vmem:[%s3436_s14 + $0x14] sm:$0x1] }
  0x23   : > { %v383_v32 = vrot.slane %v381_v23, 5  ;;  %v397_v34 = vrot.slane %v395_v24, 5  ;;  %v406_v35 = vor.u32 %v405_v21, %v402_v17  ;;  %v755_v2 = vshrl.u32 %v2961_v15, 16  ;;  %v2965_v36 = vld [vmem:[%s3436_s14 + $0x18] sm:$0xf] }
  0x24   : > { %v370_v37 = vsel %vm3454_vm3, %v365_v22, %v369_v26  ;;  %v393_v38 = vrot.slane %v392_v29, 4  ;;  %v411_v39 = vrot.slane %v409_v30, 5  ;;  %v758_v40 = vshll.u32 %v2961_v15, 16  ;;  %v2966_v41 = vld [vmem:[%s3436_s14 + $0x1c] sm:$0x1] }
  0x25   : > { %v384_v42 = vsel %vm3454_vm3, %v379_v28, %v383_v32  ;;  %v407_v43 = vrot.slane %v406_v35, 4  ;;  %v757_v44 = vrot.slane %v755_v2, 4  ;;  %v764_v45 = vshll.u32 %v2962_v20, 16  ;;  %v2967_v46 = vld [vmem:[%s3436_s14 + $0x20] sm:$0xf] }
  0x26   : > { %v2926_v47 = vcombine.low %v370_v37, %v384_v42  ;;  %v398_v48 = vsel %vm3454_vm3, %v393_v38, %v397_v34  ;;  %v760_v49 = vrot.slane %v758_v40, 5  ;;  %v769_v50 = vshrl.u32 %v2963_v25, 16  ;;  %v3340_v55 = vld [vmem:[%s3436_s14 + $0x8] ss:$8 sps:$4 sm:$0xff]   ;;  %v2968_v59 = vld [vmem:[%s3436_s14 + $0x24] sm:$0x1] }
  0x27   : > { %v412_v51 = vsel %vm3454_vm3, %v407_v43, %v411_v39  ;;  %v766_v52 = vrot.slane %v764_v45, 5  ;;  %v772_v53 = vshll.u32 %v2963_v25, 16  ;;  %v778_v54 = vshll.u32 %v2964_v31, 16  ;;  %v2969_v3 = vld [vmem:[%s3436_s14 + $0x28] sm:$0xf] }
  0x28   : > { %3179 = vmatprep.mubr.msk.bf16.mxu0 %vm434_vm0, %v2926_v47  ;;  %v2927_v56 = vcombine.low %v398_v48, %v412_v51  ;;  %v761_v57 = vor.u32 %v760_v49, %v757_v44  ;;  %v771_v58 = vrot.slane %v769_v50, 4  ;;  %v783_v60 = vshrl.u32 %v2965_v36, 16  ;;  %v2970_v8 = vld [vmem:[%s3436_s14 + $0x2c] sm:$0x1]  ;;  %v2971_v15 = vld [vmem:[%s3436_s14 + $0x30] sm:$0xf] }
  0x29   : > { %v774_v61 = vrot.slane %v772_v53, 5  ;;  %v780_v62 = vrot.slane %v778_v54, 5  ;;  %v786_v0 = vshll.u32 %v2965_v36, 16  ;;  %v792_v1 = vshll.u32 %v2966_v41, 16  ;;  %v3341_v19 = vld [vmem:[%s3436_s14 + $0x18] ss:$8 sps:$4 sm:$0xff]  }
  0x2a   : > { %3180 = vmatmul.mubr.msk.bf16.gmra.mxu0 %vm434_vm0, %v2927_v56  ;;  %v762_v4 = vrot.slane %v761_v57, 4  ;;  %v785_v5 = vrot.slane %v783_v60, 4  ;;  %v797_v6 = vshrl.u32 %v2967_v46, 16  ;;  %v800_v7 = vshll.u32 %v2967_v46, 16  ;;  %v2972_v20 = vld [vmem:[%s3436_s14 + $0x34] sm:$0x1] }
  0x2b   : > { %v775_v9 = vor.u32 %v774_v61, %v771_v58  ;;  %v788_v10 = vrot.slane %v786_v0, 5  ;;  %v794_v13 = vrot.slane %v792_v1, 5  ;;  %v806_v14 = vshll.u32 %v2968_v59, 16  ;;  %3195 = vmatprep.mubr.msk.bf16.mxu0 %vm434_vm0, %v3340_v55  ;;  %v2973_v26 = vld [vmem:[%s3436_s14 + $0x38] sm:$0xf] }
  0x2c   : > { %v767_v16 = vsel %vm3454_vm3, %v762_v4, %v766_v52  ;;  %v799_v17 = vrot.slane %v797_v6, 4  ;;  %v802_v18 = vrot.slane %v800_v7, 5  ;;  %v811_v21 = vshrl.u32 %v2969_v3, 16  ;;  %v2974_v32 = vld [vmem:[%s3436_s14 + $0x3c] sm:$0x1] }
  0x2d   : > { %v776_v22 = vrot.slane %v775_v9, 4  ;;  %v789_v23 = vor.u32 %v788_v10, %v785_v5  ;;  %v808_v24 = vrot.slane %v806_v14, 5  ;;  %v814_v25 = vshll.u32 %v2969_v3, 16  ;;  %v2975_v37 = vld [vmem:[%s3436_s14 + $0x40] sm:$0xf] }
  0x2e   : > { %v803_v28 = vor.u32 %v802_v18, %v799_v17  ;;  %v813_v29 = vrot.slane %v811_v21, 4  ;;  %v820_v30 = vshll.u32 %v2970_v8, 16  ;;  %v825_v31 = vshrl.u32 %v2971_v15, 16  ;;  %v2976_v42 = vld [vmem:[%s3436_s14 + $0x44] sm:$0x1] }
  0x2f   : > { %v781_v34 = vsel %vm3454_vm3, %v776_v22, %v780_v62  ;;  %v790_v35 = vrot.slane %v789_v23, 4  ;;  %v816_v2 = vrot.slane %v814_v25, 5  ;;  %v828_v36 = vshll.u32 %v2971_v15, 16  ;;  %v3342_v47 = vld [vmem:[%s3436_s14 + $0x28] ss:$8 sps:$4 sm:$0xff]  }
  0x30   : > { %v2979_v38 = vcombine.low %v767_v16, %v781_v34  ;;  %v804_v39 = vrot.slane %v803_v28, 4  ;;  %v822_v40 = vrot.slane %v820_v30, 5  ;;  %v827_v41 = vrot.slane %v825_v31, 4  ;;  %v3343_v3 = vld [vmem:[%s3436_s14 + $0x38] ss:$8 sps:$4 sm:$0xff]  }
  0x31   : > { %v795_v43 = vsel %vm3454_vm3, %v790_v35, %v794_v13  ;;  %v817_v44 = vor.u32 %v816_v2, %v813_v29  ;;  %v830_v45 = vrot.slane %v828_v36, 5  ;;  %v834_v46 = vshll.u32 %v2972_v20, 16  ;;  %v1001_v21 = vld [vmem:[#allocation2 + $0x8] sm:$0x1]  ;;  %v1006_v22 = vld [vmem:[#allocation2 + $0x14] sm:$0x1] }
  0x32   : > { %3205 = vmatprep.mubr.msk.bf16.mxu1 %vm434_vm0, %v2979_v38  ;;  %v809_v48 = vsel %vm3454_vm3, %v804_v39, %v808_v24  ;;  %3196 = vmatmul.mubr.msk.bf16.vlgmr.msra.gmra.mxu0 %vm434_vm0, %v3341_v19  ;;  %v839_v49 = vshrl.u32 %v2973_v26, 16  ;;  %v842_v50 = vshll.u32 %v2973_v26, 16  ;;  %v848_v51 = vshll.u32 %v2974_v32, 16  ;;  %v1016_v19 = vld [vmem:[#allocation2 + $0x2c] sm:$0x1] }
  0x33   : > { %v2980_v52 = vcombine.low %v795_v43, %v809_v48  ;;  %v818_v53 = vrot.slane %v817_v44, 4  ;;  %v831_v54 = vor.u32 %v830_v45, %v827_v41  ;;  %v836_v55 = vrot.slane %v834_v46, 5  ;;  %3199 = vmatprep.mubr.msk.bf16.mxu0 %vm434_vm0, %v3342_v47  ;;  %v2997_v25 = vld [vmem:[%s4268_s3 + $0x4] sm:$0xf]  ;;  %v1188_v26 = vld [vmem:[%s4268_s3] sm:$0xf] }
  0x34   : > { %v841_v56 = vrot.slane %v839_v49, 4  ;;  %v844_v57 = vrot.slane %v842_v50, 5  ;;  %v853_v58 = vshrl.u32 %v2975_v37, 16  ;;  %v856_v61 = vshll.u32 %v2975_v37, 16  ;;  %3313 = vmatprep.subr.msk.bf16.mxu0 %vm1224_vm8, %v2997_v25  ;;  %3314 = vmatprep.subr.msk.bf16.mxu1 %vm1224_vm8, %v1188_v26  ;;  %v3014_v30 = vld [vmem:[%s4268_s3 + $0x8] sm:$0xf] }
  0x35   : > { %3206 = vmatmul.mubr.msk.bf16.vlgmr.msra.gmra.mxu1 %vm434_vm0, %v2980_v52  ;;  %v823_v59 = vsel %vm3454_vm3, %v818_v53, %v822_v40  ;;  %v832_v60 = vrot.slane %v831_v54, 4  ;;  %v862_v62 = vshll.u32 %v2976_v42, 16  ;;  %v850_v5 = vrot.slane %v848_v51, 5  ;;  %v3588_v31 = vld [vmem:[%s4268_s3 + $0xc] sm:$0xf] }
  0x36   : > { %v845_v0 = vor.u32 %v844_v57, %v841_v56  ;;  %v855_v1 = vrot.slane %v853_v58, 4  ;;  %v858_v6 = vrot.slane %v856_v61, 5  ;;  %v3366_v17 = vmov 0   ;;  %v1011_v32 = vld [vmem:[#allocation2 + $0x20] sm:$0x1] }
  0x37   : > { %v837_v4 = vsel %vm3454_vm3, %v832_v60, %v836_v55  ;;  %v864_v10 = vrot.slane %v862_v62, 5  ;;  %1015 = vst.msk [vmem:[#allocation2 + $0x28] sm:$0xf] %vm995_vm4, %v3366_v17  ;;  %996 = vst.msk [vmem:[#allocation2] sm:$0xf] %vm995_vm4, %v3366_v17  ;;  %v1017_v20 = vsel %vm3562_vm7, 0, %v1016_v19 }
  0x38   : > { %v2981_v7 = vcombine.low %v823_v59, %v837_v4  ;;  %v846_v8 = vrot.slane %v845_v0, 4  ;;  %v859_v9 = vor.u32 %v858_v6, %v855_v1  ;;  %997 = vst.msk [vmem:[#allocation2 + $0x4] sm:$0xf] %vm995_vm4, %v3366_v17  ;;  %1004 = vst.msk [vmem:[#allocation2 + $0xc] sm:$0xf] %vm995_vm4, %v3366_v17  ;;  %v1002_v23 = vsel %vm3562_vm7, 0, %v1001_v21 }
  0x39   : > { %1005 = vst.msk [vmem:[#allocation2 + $0x10] sm:$0xf] %vm995_vm4, %v3366_v17  ;;  %1009 = vst.msk [vmem:[#allocation2 + $0x18] sm:$0xf] %vm995_vm4, %v3366_v17  ;;  %v1007_v24 = vsel %vm3562_vm7, 0, %v1006_v22  ;;  %v1226_v28 = vsel %vm1224_vm8, %v2997_v25, 0 }
  0x3a   : > { %3209 = vmatprep.mubr.msk.bf16.mxu1 %vm434_vm0, %v2981_v7  ;;  %3200 = vmatmul.mubr.msk.bf16.gmra.mxu0 %vm434_vm0, %v3343_v3  ;;  %v851_v13 = vsel %vm3454_vm3, %v846_v8, %v850_v5  ;;  %v860_v14 = vrot.slane %v859_v9, 4  ;;  %1010 = vst.msk [vmem:[#allocation2 + $0x1c] sm:$0xf] %vm995_vm4, %v3366_v17  ;;  %1014 = vst.msk [vmem:[#allocation2 + $0x24] sm:$0xf] %vm995_vm4, %v3366_v17  ;;  %v1318_v29 = vsel %vm1224_vm8, %v1188_v26, 0 }
  0x3b   : > { %1019 = vst.msk [vmem:[#allocation2 + $0x30] sm:$0xf] %vm995_vm4, %v3366_v17  ;;  %1020 = vst.msk [vmem:[#allocation2 + $0x34] sm:$0xf] %vm995_vm4, %v3366_v17  ;;  %3214 = vmatpush3.bf16.msra.mxu0 %v1226_v28  ;;  %3224 = vmatpush3.bf16.msra.mxu1 %v1318_v29  ;;  %v1012_v34 = vsel %vm3562_vm7, 0, %v1011_v32  ;;  %v3620_v1 = vsel %vm1224_vm8, %v3014_v30, 0 }
  0x3c   : > { %v865_v15 = vsel %vm3454_vm3, %v860_v14, %v864_v10  ;;  %1024 = vst.msk [vmem:[#allocation2 + $0x3c] sm:$0xf] %vm995_vm4, %v3366_v17  ;;  %1025 = vst.msk [vmem:[#allocation2 + $0x40] sm:$0xf] %vm995_vm4, %v3366_v17  ;;  %3315 = vmatprep.subr.msk.bf16.mxu0 %vm1224_vm8, %v3014_v30  ;;  %3316 = vmatprep.subr.msk.bf16.mxu1 %vm1224_vm8, %v3588_v31  ;;  %v1021_v35 = vld [vmem:[#allocation2 + $0x38] sm:$0x1] }
  0x3d   : > { %v2982_v16 = vcombine.low %v851_v13, %v865_v15  ;;  %1029 = vst.msk [vmem:[#allocation2 + $0x48] sm:$0xf] %vm995_vm4, %v3366_v17  ;;  %1030 = vst.msk [vmem:[#allocation2 + $0x4c] sm:$0xf] %vm995_vm4, %v3366_v17  ;;  %v1022_v2 = vsel %vm3562_vm7, 0, %v1021_v35 }
  0x3e   : > { %1034 = vst.msk [vmem:[#allocation2 + $0x54] sm:$0xf] %vm995_vm4, %v3366_v17  ;;  %1035 = vst.msk [vmem:[#allocation2 + $0x58] sm:$0xf] %vm995_vm4, %v3366_v17  ;;  %v1026_v36 = vld [vmem:[#allocation2 + $0x44] sm:$0x1] }
  0x3f   : > { %3210 = vmatmul.mubr.msk.bf16.gmra.mxu1 %vm434_vm0, %v2982_v16  ;;  %1039 = vst.msk [vmem:[#allocation2 + $0x60] sm:$0xf] %vm995_vm4, %v3366_v17  ;;  %1040 = vst.msk [vmem:[#allocation2 + $0x64] sm:$0xf] %vm995_vm4, %v3366_v17  ;;  %v1027_v37 = vsel %vm3562_vm7, 0, %v1026_v36 }
  0x40   : > { %1044 = vst.msk [vmem:[#allocation2 + $0x6c] sm:$0xf] %vm995_vm4, %v3366_v17  ;;  %1045 = vst.msk [vmem:[#allocation2 + $0x70] sm:$0xf] %vm995_vm4, %v3366_v17  ;;  %v1036_v38 = vld [vmem:[#allocation2 + $0x5c] sm:$0x1] }
  0x41   : > { %1018 = vst [vmem:[#allocation2 + $0x2c] sm:$0x1] %v1017_v20  ;;  %1003 = vst [vmem:[#allocation2 + $0x8] sm:$0x1] %v1002_v23  ;;  %v1037_v39 = vsel %vm3562_vm7, 0, %v1036_v38  ;;  %v3634_v38 = vsel %vm1224_vm8, %v3588_v31, 0 }
  0x42   : > { %1008 = vst [vmem:[#allocation2 + $0x14] sm:$0x1] %v1007_v24  ;;  %1013 = vst [vmem:[#allocation2 + $0x20] sm:$0x1] %v1012_v34  ;;  %v1031_v40 = vld [vmem:[#allocation2 + $0x50] sm:$0x1] }
  0x43   : > { %1023 = vst [vmem:[#allocation2 + $0x38] sm:$0x1] %v1022_v2  ;;  %1028 = vst [vmem:[#allocation2 + $0x44] sm:$0x1] %v1027_v37  ;;  %v1032_v41 = vsel %vm3562_vm7, 0, %v1031_v40 }
  0x44   : > { %1038 = vst [vmem:[#allocation2 + $0x5c] sm:$0x1] %v1037_v39  ;;  %1033 = vst [vmem:[#allocation2 + $0x50] sm:$0x1] %v1032_v41  ;;  %v1041_v42 = vld [vmem:[#allocation2 + $0x68] sm:$0x1] }
  0x45   : > { %v1042_v43 = vsel %vm3562_vm7, 0, %v1041_v42  ;;  %v1046_v44 = vld [vmem:[#allocation2 + $0x74] sm:$0x1]  ;;  %v3607_v46 = vld [vmem:[#allocation2 + $0x4] sm:$0xf] }
  0x46   : > { %1043 = vst [vmem:[#allocation2 + $0x68] sm:$0x1] %v1042_v43  ;;  %v1047_v45 = vsel %vm3562_vm7, 0, %v1046_v44  ;;  %v1066_v47 = vld [vmem:[#allocation2] sm:$0x8]  ;;  %v1090_v50 = vshrl.u32 %v3607_v46, 16 }
  0x47   : > { %1048 = vst [vmem:[#allocation2 + $0x74] sm:$0x1] %v1047_v45  ;;  %v1068_v48 = vld [vmem:[#allocation2 + $0xc] sm:$0x8]  ;;  %v1385_v49 = vld [vmem:[#allocation2 + $0x4] sm:$0xf] }
  0x48   : > { %v1085_v51 = vshrl.u32 %v1066_v47, 16  ;;  %v1098_v52 = vshrl.u32 %v1068_v48, 16  ;;  %v1072_v53 = vld [vmem:[#allocation2 + $0x24] sm:$0x8]  ;;  %v1402_v54 = vshrl.u32 %v1385_v49, 16  ;;  %v1405_v55 = vshll.u32 %v1385_v49, 16 }
  0x49   : > { %v1070_v56 = vld [vmem:[#allocation2 + $0x18] sm:$0x8]  ;;  %v3613_v59 = vrot.slane %v1090_v50, 7  ;;  %v1124_v62 = vshrl.u32 %v1072_v53, 16  ;;  %v1386_v0 = vld [vmem:[#allocation2 + $0x8] sm:$0x1] }
  0x4a   : > { %v3615_v60 = vrot.slane %v1085_v51, 11  ;;  %v3617_v61 = vrot.slane %v1098_v52, 11  ;;  %v1111_v3 = vshrl.u32 %v1070_v56, 16  ;;  %v1388_v4 = vld [vmem:[#allocation2 + $0x14] sm:$0x1]  ;;  %v1404_v5 = vrot.slane %v1402_v54, 4 }
  0x4b   : > { %v1407_v6 = vrot.slane %v1405_v55, 5  ;;  %v1074_v8 = vld [vmem:[#allocation2 + $0x30] sm:$0x8]  ;;  %v1080_v9 = vld [vmem:[#allocation2 + $0x54] sm:$0x8]  ;;  %v1411_v21 = vshll.u32 %v1386_v0, 16 }
  0x4c   : > { %v1392_v10 = vld [vmem:[#allocation2 + $0x2c] sm:$0x1]  ;;  %v1076_v13 = vld [vmem:[#allocation2 + $0x3c] sm:$0x8]  ;;  %v1615_v14 = vld [vmem:[#allocation2 + $0xc] sm:$0x8] }
  0x4d   : > { %v1617_v15 = vld [vmem:[#allocation2 + $0x18] sm:$0x8]  ;;  %v1078_v16 = vld [vmem:[#allocation2 + $0x48] sm:$0x8]  ;;  %v1390_v17 = vld [vmem:[#allocation2 + $0x20] sm:$0x1]  ;;  %v1408_v20 = vor.u32 %v1407_v6, %v1404_v5 }
  0x4e   : > { %v1619_v18 = vld [vmem:[#allocation2 + $0x24] sm:$0x8]  ;;  %v1425_v22 = vshll.u32 %v1388_v4, 16  ;;  %v1137_v23 = vshrl.u32 %v1074_v8, 16  ;;  %v1621_v24 = vld [vmem:[#allocation2 + $0x30] sm:$0x8] }
  0x4f   : > { %v1150_v25 = vshrl.u32 %v1076_v13, 16  ;;  %v1176_v26 = vshrl.u32 %v1080_v9, 16  ;;  %v1453_v28 = vshll.u32 %v1392_v10, 16  ;;  %v1632_v29 = vshrl.u32 %v1615_v14, 16  ;;  %v1394_v45 = vld [vmem:[#allocation2 + $0x38] sm:$0x1] }
  0x50   : > { %v1163_v30 = vshrl.u32 %v1078_v16, 16  ;;  %v1439_v32 = vshll.u32 %v1390_v17, 16  ;;  %v1645_v34 = vshrl.u32 %v1617_v15, 16  ;;  %v1658_v35 = vshrl.u32 %v1619_v18, 16  ;;  %v1396_v56 = vld [vmem:[#allocation2 + $0x44] sm:$0x1] }
  0x51   : > { %v3628_v36 = vrot.slane %v1111_v3, 11  ;;  %v3630_v37 = vrot.slane %v1124_v62, 11  ;;  %v1671_v39 = vshrl.u32 %v1621_v24, 16  ;;  %v3638_v41 = vrot.slane %v1408_v20, 4  ;;  %v1623_v3 = vld [vmem:[#allocation2 + $0x3c] sm:$0x8] }
  0x52   : > { %v3640_v42 = vrot.slane %v1411_v21, 5  ;;  %v3642_v43 = vrot.slane %v1425_v22, 5  ;;  %v3644_v44 = vrot.slane %v1137_v23, 11  ;;  %v3648_v48 = vrot.slane %v1150_v25, 11  ;;  %v3673_v5 = vld [vmem:[%s4268_s3 + $0x10] sm:$0xf] }
  0x53   : > { %v3650_v49 = vrot.slane %v1176_v26, 11  ;;  %v3652_v31 = vrot.slane %v1453_v28, 5  ;;  %v3654_v50 = vrot.slane %v1632_v29, 11  ;;  %v3656_v51 = vrot.slane %v1163_v30, 11  ;;  %v1400_v6 = vld [vmem:[#allocation2 + $0x5c] sm:$0x1] }
  0x54   : > { %v3658_v52 = vrot.slane %v1439_v32, 5  ;;  %v3660_v53 = vrot.slane %v1645_v34, 11  ;;  %v3662_v54 = vrot.slane %v1658_v35, 11  ;;  %v1467_v62 = vshll.u32 %v1394_v45, 16  ;;  %v1627_v8 = vld [vmem:[#allocation2 + $0x54] sm:$0x8] }
  0x55   : > { %v3666_v0 = vrot.slane %v1671_v39, 11  ;;  %v3680_v10 = vld [vmem:[%s4268_s3 + $0x14] sm:$0xf]  ;;  %v1398_v13 = vld [vmem:[#allocation2 + $0x50] sm:$0x1]  ;;  %v1481_v15 = vshll.u32 %v1396_v56, 16 }
  0x56   : > { %4287 = vst [vmem:[#allocation7_spill] sm:$0xff] %v3662_v54  ;;  %v1625_v14 = vld [vmem:[#allocation2 + $0x48] sm:$0x8]  ;;  %v1684_v16 = vshrl.u32 %v1623_v3, 16  ;;  %v1629_v17 = vld [vmem:[#allocation2 + $0x60] sm:$0x8] }
  0x57   : > { %4288 = vst [vmem:[#allocation8_spill] sm:$0xff] %v3666_v0  ;;  %v1948_v18 = vld [vmem:[#allocation2 + $0x14] sm:$0x1]  ;;  %v3682_v20 = vrot.slane %v1467_v62, 5  ;;  %v3686_v21 = vsel %vm1224_vm8, %v3673_v5, 0  ;;  %v1509_v22 = vshll.u32 %v1400_v6, 16 }
  0x58   : > { %4289 = vst [vmem:[#allocation9_spill] sm:$0xff] %v3686_v21  ;;  %v1710_v23 = vshrl.u32 %v1627_v8, 16  ;;  %v2180_v24 = vld [vmem:[#allocation2 + $0x24] sm:$0x8]  ;;  %v1495_v26 = vshll.u32 %v1398_v13, 16  ;;  %v1697_v28 = vshrl.u32 %v1625_v14, 16 }
  0x59   : > { %v1950_v29 = vld [vmem:[#allocation2 + $0x20] sm:$0x1]  ;;  %v1952_v30 = vld [vmem:[#allocation2 + $0x2c] sm:$0x1]  ;;  %v1723_v34 = vshrl.u32 %v1629_v17, 16  ;;  %v1973_v35 = vshll.u32 %v1948_v18, 16 }
  0x5a   : > { %v1954_v39 = vld [vmem:[#allocation2 + $0x38] sm:$0x1]  ;;  %v2178_v45 = vld [vmem:[#allocation2 + $0x18] sm:$0x8]  ;;  %v3692_v56 = vrot.slane %v1481_v15, 5  ;;  %v3696_v62 = vsel %vm1224_vm8, %v3680_v10, 0 }
  0x5b   : > { %4291 = vst [vmem:[#allocation11_spill] sm:$0xff] %v3696_v62  ;;  %v3698_v3 = vrot.slane %v1684_v16, 11  ;;  %v2208_v6 = vshrl.u32 %v2180_v24, 16  ;;  %v1987_v13 = vshll.u32 %v1950_v29, 16  ;;  %v2001_v14 = vshll.u32 %v1952_v30, 16 }
  0x5c   : > { %4290 = vst [vmem:[#allocation10_spill] sm:$0xff] %v3692_v56  ;;  %v1956_v57 = vld [vmem:[#allocation2 + $0x44] sm:$0x1]  ;;  %v2182_v11 = vld [vmem:[#allocation2 + $0x30] sm:$0x8]  ;;  %v3704_v17 = vrot.slane %v1509_v22, 5 }
  0x5d   : > { %4292 = vst [vmem:[#allocation12_spill] sm:$0xff] %v3698_v3  ;;  %v3706_v18 = vrot.slane %v1710_v23, 11  ;;  %v3711_v15 = vld [vmem:[%s4268_s3 + $0x18] sm:$0xf]  ;;  %v2015_v16 = vshll.u32 %v1954_v39, 16  ;;  %v2195_v27 = vshrl.u32 %v2178_v45, 16 }
  0x5e   : > { %4293 = vst [vmem:[#allocation13_spill] sm:$0xff] %v3704_v17  ;;  %4295 = vst [vmem:[#allocation15_spill] sm:$0xff] %v3711_v15  ;;  %v3715_v12 = vrot.slane %v1495_v26, 5  ;;  %v3717_v29 = vrot.slane %v1697_v28, 11  ;;  %v3719_v30 = vrot.slane %v1723_v34, 11  ;;  %v3721_v3 = vrot.slane %v1973_v35, 5 }
  0x5f   : > { %4294 = vst [vmem:[#allocation14_spill] sm:$0xff] %v3706_v18  ;;  %v4300_v22 = vshll.u32 %v3607_v46, 16  ;;  %v3731_v39 = vld [vmem:[%s4268_s3 + $0x1c] sm:$0xf]  ;;  %v1958_v45 = vld [vmem:[#allocation2 + $0x50] sm:$0x1] }
  0x60   : > { %4296 = vst [vmem:[#allocation16_spill] sm:$0xff] %v3715_v12  ;;  %4297 = vst [vmem:[#allocation17_spill] sm:$0xff] %v3717_v29  ;;  %v2029_v18 = vshll.u32 %v1956_v57, 16  ;;  %v2221_v26 = vshrl.u32 %v2182_v11, 16  ;;  %v3735_v28 = vrot.slane %v1987_v13, 5  ;;  %v3739_v34 = vsel %vm1224_vm8, %v3711_v15, 0 }
  0x61   : > { %4298 = vst [vmem:[#allocation18_spill] sm:$0xff] %v3719_v30  ;;  %4299 = vst [vmem:[#allocation19_spill] sm:$0xff] %v3721_v3  ;;  %v3726_v23 = vor.u32 %v4300_v22, %v3613_v59  ;;  %v3741_v35 = vrot.slane %v2001_v14, 5  ;;  %v3743_v59 = vrot.slane %v2208_v6, 11  ;;  %v3749_v30 = vrot.slane %v2015_v16, 5 }
  0x62   : > { %4301 = vst [vmem:[#allocation20_spill] sm:$0xff] %v3731_v39  ;;  %4302 = vst [vmem:[#allocation21_spill] sm:$0xff] %v3735_v28  ;;  %v3751_v11 = vrot.slane %v2195_v27, 11  ;;  %v1960_v57 = vld [vmem:[#allocation2 + $0x5c] sm:$0x1]  ;;  %v3755_v29 = vsel %vm1224_vm8, %v3731_v39, 0 }
  0x63   : > { %4303 = vst [vmem:[#allocation22_spill] sm:$0xff] %v3739_v34  ;;  %4304 = vst [vmem:[#allocation23_spill] sm:$0xff] %v3741_v35  ;;  %v2188_v13 = vld [vmem:[#allocation2 + $0x54] sm:$0x8]  ;;  %v2043_v14 = vshll.u32 %v1958_v45, 16  ;;  %v3767_v16 = vrot.slane %v2029_v18, 5 }
  0x64   : > { %4305 = vst [vmem:[#allocation24_spill] sm:$0xff] %v3743_v59  ;;  %4306 = vst [vmem:[#allocation25_spill] sm:$0xff] %v3749_v30  ;;  %v2184_v35 = vld [vmem:[#allocation2 + $0x3c] sm:$0x8]  ;;  %v3757_v6 = vld [vmem:[#allocation2 + $0x70] sm:$0xf] }
  0x65   : > { %4307 = vst [vmem:[#allocation26_spill] sm:$0xff] %v3751_v11  ;;  %4308 = vst [vmem:[#allocation27_spill] sm:$0xff] %v3755_v29  ;;  %v1962_v59 = vld [vmem:[#allocation2 + $0x68] sm:$0x1]  ;;  %v3769_v11 = vrot.slane %v2221_v26, 11  ;;  %v2234_v30 = vshrl.u32 %v2184_v35, 16 }
  0x66   : > { %4311 = vst [vmem:[#allocation28_spill] sm:$0xff] %v3767_v16  ;;  %v2190_v29 = vld [vmem:[#allocation2 + $0x60] sm:$0x8]  ;;  %v2192_v18 = vld [vmem:[#allocation2 + $0x6c] sm:$0x8]  ;;  %v2291_v39 = vshrl.u32 %v3757_v6, 16 }
  0x67   : > { %4312 = vst [vmem:[#allocation29_spill] sm:$0xff] %v3769_v11  ;;  %v3784_v16 = vld [vmem:[%s4267_s2] ss:$0 sm:$0xff]  ;;  %v2286_v56 = vshrl.u32 %v2192_v18, 16 }
  0xd8   : > { %v3611_v58 = vpop.f32.mrf.mxu1 }
  0xda   : > { %v3622_v7 = vpop.f32.mrf.mxu1 }
  0xdc   : > { %v3624_v19 = vpop.f32.mrf.mxu1 }
  0xde   : > { %v3636_v40 = vpop.f32.mrf.mxu1 }
  0xe0   : > { %v3626_v2 = vpop.f32.mrf.mxu0 }
  0xe1   : > { %v3668_v4 = vpop.f32.mrf.mxu1  ;;  %v593_v22 = vadd.f32 %v3611_v58, %v3626_v2 }
  0xe2   : > { %v3646_v47 = vpop.f32.mrf.mxu0 }
  0xe3   : > { %v3688_v25 = vpop.f32.mrf.mxu1  ;;  %v585_v58 = vadd.f32 %v3622_v7, %v3646_v47  ;;  %v2057_v47 = vshll.u32 %v1960_v57, 16  ;;  %v3787_v7 = vrot.slane %v2043_v14, 5  ;;  %v2071_v57 = vshll.u32 %v1962_v59, 16 }
  0xe4   : > { %v3664_v55 = vpop.f32.mrf.mxu0  ;;  %v2294_v59 = vshll.u32 %v3757_v6, 16 }
  0xe5   : > { %v3702_v63 = vpop.f32.mrf.mxu1  ;;  %v596_v26 = vadd.f32 %v3624_v19, %v3664_v55  ;;  %v3792_v35 = vrot.slane %v2057_v47, 5  ;;  %v3800_v18 = vrot.slane %v2071_v57, 5  ;;  %v2515_v57 = vld [vmem:[#allocation2 + $0x38] sm:$0x1] }
  0xe6   : > { %v3675_v9 = vpop.f32.mrf.mxu0 }
  0xe7   : > { %v3747_v3 = vpop.f32.mrf.mxu1  ;;  %v588_v15 = vadd.f32 %v3636_v40, %v3675_v9 }
  0xea   : > { %v3690_v32 = vpop.f32.mrf.mxu0 }
  0xec   : > { %v3700_v8 = vpop.f32.mrf.mxu0 }
  0xee   : > { %v3713_v24 = vpop.f32.mrf.mxu0 }
  0xf0   : > { %v3733_v17 = vpop.f32.mrf.mxu0 }
  0xf2   : > { %v3197_v28 = vpop.f32.mrf.mxu0 }
  0xf3   : > { %v732_v2 = vadd.f32 %v3197_v28, %v593_v22  ;;  %v2186_v28 = vld [vmem:[#allocation2 + $0x48] sm:$0x8]  ;;  %v2260_v22 = vshrl.u32 %v2188_v13, 16  ;;  %v2273_v13 = vshrl.u32 %v2190_v29, 16  ;;  %v2293_v29 = vrot.slane %v2291_v39, 7 }
  0xf4   : > { %v699_v45 = vpop.f32.mrf.mxu0  ;;  %v2247_v0 = vshrl.u32 %v2186_v28, 16  ;;  %v2513_v39 = vld [vmem:[#allocation2 + $0x2c] sm:$0x1] }
  0xf5   : > { %v3207_v11 = vpop.f32.mrf.mxu1  ;;  %v730_v34 = vadd.f32 %v699_v45, %v585_v58  ;;  %v3794_v45 = vrot.slane %v2260_v22, 11 }
  0xf6   : > { %v966_v62 = vadd.f32 %v3207_v11, %v732_v2  ;;  %v3198_v12 = vpop.f32.mrf.mxu0  ;;  %v3796_v2 = vrot.slane %v2234_v30, 11  ;;  %v3804_v22 = vrot.slane %v2247_v0, 11  ;;  %v3808_v30 = vrot.slane %v2286_v56, 11 }
  0xf7   : > { %v933_v19 = vpop.f32.mrf.mxu1  ;;  %v733_v55 = vadd.f32 %v3198_v12, %v596_v26 }
  0xf8   : > { %v981_v54 = vadd.f32 %v3784_v16, %v966_v62  ;;  %v964_v21 = vadd.f32 %v933_v19, %v730_v34  ;;  %v702_v58 = vpop.f32.mrf.mxu0  ;;  %v2511_v62 = vld [vmem:[#allocation2 + $0x20] sm:$0x1]  ;;  %v609_v34 = vadd.f32 %v3668_v4, %v3690_v32  ;;  %v3813_v32 = vor.u32 %v2294_v59, %v2293_v29 }
  0xf9   : > { %v3208_v11 = vpop.f32.mrf.mxu1  ;;  %v731_v14 = vadd.f32 %v702_v58, %v588_v15  ;;  %v3806_v15 = vrot.slane %v2273_v13, 11  ;;  %v601_v58 = vadd.f32 %v3688_v25, %v3700_v8  ;;  %v2536_v0 = vshll.u32 %v2511_v62, 16  ;;  %v2524_v13 = vld [vmem:[#allocation2 + $0x70] sm:$0xf]  ;;  %v3822_v25 = vld [vmem:[%s4268_s3 + $0x20] sm:$0xf] }
  0xfa   : > { %v989_v40 = vmax.f32 %v981_v54, 0.0  ;;  %v979_v12 = vadd.f32 %v3784_v16, %v964_v21  ;;  %v967_v9 = vadd.f32 %v3208_v11, %v733_v55  ;;  %v3201_v28 = vpop.f32.mrf.mxu0  ;;  %v2521_v55 = vld [vmem:[#allocation2 + $0x5c] sm:$0x1]  ;;  %v2564_v8 = vshll.u32 %v2515_v57, 16 }
  0xfb   : > { %v936_v47 = vpop.f32.mrf.mxu1  ;;  %4313 = vst [vmem:[#allocation30_spill] sm:$0xff] %v3806_v15  ;;  %v736_v4 = vadd.f32 %v3201_v28, %v609_v34  ;;  %v2606_v29 = vshll.u32 %v2521_v55, 16  ;;  %v3830_v57 = vsel %vm1224_vm8, %v3822_v25, 0 }
  0xfc   : > { %v1051_v6 = vpack.c.bf16 %v989_v40, %v989_v40  ;;  %v987_v54 = vmax.f32 %v979_v12, 0.0  ;;  %v982_v21 = vadd.f32 %v3784_v16, %v967_v9  ;;  %v965_v26 = vadd.f32 %v936_v47, %v731_v14  ;;  %v715_v19 = vpop.f32.mrf.mxu0  ;;  %v2517_v14 = vld [vmem:[#allocation2 + $0x44] sm:$0x1] }
  0xfd   : > { %v2550_v9 = vshll.u32 %v2513_v39, 16  ;;  %v612_v47 = vadd.f32 %v3702_v63, %v3713_v24  ;;  %v734_v15 = vadd.f32 %v715_v19, %v601_v58  ;;  %v2625_v39 = vshrl.u32 %v2524_v13, 16 }
  0xfe   : > { %1060 = vst.msk [vmem:[#allocation2 + $0x28] sm:$0xf] %vm995_vm4, %v1051_v6  ;;  %v1049_v56 = vpack.c.bf16 %v987_v54, %v987_v54  ;;  %v990_v11 = vmax.f32 %v982_v21, 0.0  ;;  %v980_v40 = vadd.f32 %v3784_v16, %v965_v26  ;;  %v3202_v12 = vpop.f32.mrf.mxu0  ;;  %v2628_v6 = vshll.u32 %v2524_v13, 16 }
  0xff   : > { %v3211_v28 = vpop.f32.mrf.mxu1  ;;  %v604_v63 = vadd.f32 %v3747_v3, %v3733_v17  ;;  %v737_v54 = vadd.f32 %v3202_v12, %v612_v47  ;;  %v2578_v21 = vshll.u32 %v2517_v14, 16  ;;  %v3836_v58 = vrot.slane %v2536_v0, 5 }
 0x100   : > { %1058 = vst.msk [vmem:[#allocation2 + $0x10] sm:$0xf] %vm995_vm4, %v1049_v56  ;;  %v1052_v59 = vpack.c.bf16 %v990_v11, %v990_v11  ;;  %v988_v62 = vmax.f32 %v980_v40, 0.0  ;;  %v718_v34 = vpop.f32.mrf.mxu0  ;;  %v970_v24 = vadd.f32 %v3211_v28, %v736_v4  ;;  %v3839_v13 = vrot.slane %v2550_v9, 5 }
 0x101   : > { %v949_v19 = vpop.f32.mrf.mxu1  ;;  %v735_v4 = vadd.f32 %v718_v34, %v604_v63  ;;  %v3842_v11 = vrot.slane %v2564_v8, 5  ;;  %v3844_v40 = vrot.slane %v2606_v29, 5  ;;  %v3846_v12 = vrot.slane %v2625_v39, 4 }
 0x102   : > { %1061 = vst.msk [vmem:[#allocation2 + $0x34] sm:$0xf] %vm995_vm4, %v1052_v59  ;;  %v1050_v26 = vpack.c.bf16 %v988_v62, %v988_v62  ;;  %v985_v3 = vadd.f32 %v3784_v16, %v970_v24  ;;  %v968_v17 = vadd.f32 %v949_v19, %v734_v15  ;;  %v3848_v14 = vrot.slane %v2628_v6, 5 }
 0x103   : > { %v3212_v56 = vpop.f32.mrf.mxu1  ;;  %4314 = vst [vmem:[#allocation31_spill] sm:$0xff] %v3842_v11  ;;  %4315 = vst [vmem:[#allocation32_spill] sm:$0xff] %v3844_v40  ;;  %v3851_v62 = vrot.slane %v2578_v21, 5 }
 0x104   : > { %1059 = vst.msk [vmem:[#allocation2 + $0x1c] sm:$0xf] %vm995_vm4, %v1050_v26  ;;  %4316 = vst [vmem:[#allocation33_spill] sm:$0xff] %v3846_v12  ;;  %v993_v47 = vmax.f32 %v985_v3, 0.0  ;;  %v983_v0 = vadd.f32 %v3784_v16, %v968_v17  ;;  %v971_v59 = vadd.f32 %v3212_v56, %v737_v54 }
 0x105   : > { %4317 = vst [vmem:[#allocation34_spill] sm:$0xff] %v3848_v14  ;;  %v1073_v28 = vld [vmem:[#allocation2 + $0x28] sm:$0xf]  ;;  %4318 = vst [vmem:[#allocation35_spill] sm:$0xff] %v3851_v62  ;;  %v952_v9 = vpop.f32.mrf.mxu1 }
 0x106   : > { %v1391_v15 = vld [vmem:[#allocation2 + $0x28] sm:$0xf]  ;;  %v1129_v34 = vshrl.u32 %v1073_v28, 16  ;;  %v1132_v63 = vshll.u32 %v1073_v28, 16  ;;  %v1055_v26 = vpack.c.bf16 %v993_v47, %v993_v47  ;;  %v991_v29 = vmax.f32 %v983_v0, 0.0 }
 0x107   : > { %v1444_v24 = vshrl.u32 %v1391_v15, 16  ;;  %v1447_v8 = vshll.u32 %v1391_v15, 16  ;;  %v986_v39 = vadd.f32 %v3784_v16, %v971_v59  ;;  %v969_v19 = vadd.f32 %v952_v9, %v735_v4  ;;  %v1069_v6 = vld [vmem:[#allocation2 + $0x10] sm:$0xf] }
 0x108   : > { %v1387_v55 = vld [vmem:[#allocation2 + $0x10] sm:$0xf]  ;;  %v1103_v3 = vshrl.u32 %v1069_v6, 16  ;;  %v1106_v40 = vshll.u32 %v1069_v6, 16  ;;  %v2998_v54 = vcombine.low %v3607_v46, %v1069_v6  ;;  %v1131_v17 = vrot.slane %v1129_v34, 7 }
 0x109   : > { %1064 = vst.msk [vmem:[#allocation2 + $0x58] sm:$0xf] %vm995_vm4, %v1055_v26  ;;  %v1053_v21 = vpack.c.bf16 %v991_v29, %v991_v29  ;;  %v994_v56 = vmax.f32 %v986_v39, 0.0  ;;  %v984_v11 = vadd.f32 %v3784_v16, %v969_v19  ;;  %v1075_v62 = vld [vmem:[#allocation2 + $0x34] sm:$0xf]  ;;  %v1416_v15 = vshrl.u32 %v1387_v55, 16 }
 0x10a   : > { %v1105_v47 = vrot.slane %v1103_v3, 7  ;;  %3215 = vmatprep.mubr.msk.bf16.mxu0 %vm1211_vm11, %v2998_v54  ;;  %v1142_v0 = vshrl.u32 %v1075_v62, 16  ;;  %v1145_v4 = vshll.u32 %v1075_v62, 16  ;;  %v1134_v59 = vor.u32 %v1132_v63, %v1131_v17 }
 0x10b   : > { %1062 = vst.msk [vmem:[#allocation2 + $0x40] sm:$0xf] %vm995_vm4, %v1053_v21  ;;  %v1056_v9 = vpack.c.bf16 %v994_v56, %v994_v56  ;;  %v992_v14 = vmax.f32 %v984_v11, 0.0  ;;  %v1071_v46 = vld [vmem:[#allocation2 + $0x1c] sm:$0xf]  ;;  %v1418_v34 = vrot.slane %v1416_v15, 4 }
 0x10c   : > { %v1419_v6 = vshll.u32 %v1387_v55, 16  ;;  %v1116_v26 = vshrl.u32 %v1071_v46, 16  ;;  %v1119_v29 = vshll.u32 %v1071_v46, 16  ;;  %v2999_v39 = vcombine.low %v1071_v46, %v1073_v28  ;;  %v1389_v16 = vld [vmem:[#allocation2 + $0x1c] sm:$0xf] }
 0x10d   : > { %v1108_v12 = vor.u32 %v1106_v40, %v1105_v47  ;;  %1065 = vst.msk [vmem:[#allocation2 + $0x64] sm:$0xf] %vm995_vm4, %v1056_v9  ;;  %v1054_v19 = vpack.c.bf16 %v992_v14, %v992_v14  ;;  %v1144_v3 = vrot.slane %v1142_v0, 7  ;;  %v1135_v63 = vsel %vm3763_vm10, %v3630_v37, %v1134_v59  ;;  %v3874_v15 = vld [vmem:[#allocation2 + $0x10] sm:$0xf] }
 0x10e   : > { %v1421_v54 = vrot.slane %v1419_v6, 5  ;;  %v1118_v17 = vrot.slane %v1116_v26, 7  ;;  %3216 = vmatmul.mubr.msk.bf16.vlgmr.msra.gmra.mxu0 %vm1211_vm11, %v2999_v39  ;;  %v1430_v11 = vshrl.u32 %v1389_v16, 16  ;;  %v1433_v28 = vshll.u32 %v1389_v16, 16  ;;  %v3886_v39 = vld [vmem:[#allocation2 + $0x1c] sm:$0xf] }
 0x10f   : > { %v1109_v55 = vsel %vm3763_vm10, %v3617_v61, %v1108_v12  ;;  %1063 = vst.msk [vmem:[#allocation2 + $0x4c] sm:$0xf] %vm995_vm4, %v1054_v19  ;;  %v4319_v40 = vsel %vm3763_vm10, %v3615_v60, %v3726_v23  ;;  %3234 = vmatpush3.bf16.msra.mxu0 %v3620_v1  ;;  %v1147_v21 = vor.u32 %v1145_v4, %v1144_v3  ;;  %v1446_v56 = vrot.slane %v1444_v24, 4 }
 0x110   : > { %v3006_v14 = vcombine.low %v4319_v40, %v1109_v55  ;;  %v1422_v37 = vor.u32 %v1421_v54, %v1418_v34  ;;  %v1121_v47 = vor.u32 %v1119_v29, %v1118_v17  ;;  %v1081_v0 = vld [vmem:[#allocation2 + $0x58] sm:$0xf]  ;;  %v1432_v61 = vrot.slane %v1430_v11, 4  ;;  %3317 = vmatprep.subr.msk.bf16.mxu0 %vm1224_vm8, %v3673_v5 }
 0x111   : > { %v1435_v12 = vrot.slane %v1433_v28, 5  ;;  %v1449_v59 = vrot.slane %v1447_v8, 5  ;;  %v1181_v9 = vshrl.u32 %v1081_v0, 16  ;;  %v1184_v60 = vshll.u32 %v1081_v0, 16 }
 0x112   : > { %3225 = vmatprep.mubr.msk.bf16.mxu1 %vm1211_vm11, %v3006_v14  ;;  %v1423_v23 = vrot.slane %v1422_v37, 4  ;;  %v1148_v1 = vsel %vm3763_vm10, %v3644_v44, %v1147_v21  ;;  %v1077_v24 = vld [vmem:[#allocation2 + $0x40] sm:$0xf]  ;;  %v1122_v4 = vsel %vm3763_vm10, %v3628_v36, %v1121_v47  ;;  %v1637_v8 = vshrl.u32 %v3874_v15, 16  ;;  %v1393_v14 = vld [vmem:[#allocation2 + $0x34] sm:$0xf] }
 0x113   : > { %v1436_v46 = vor.u32 %v1435_v12, %v1432_v61  ;;  %v1450_v34 = vor.u32 %v1449_v59, %v1446_v56  ;;  %v1155_v6 = vshrl.u32 %v1077_v24, 16  ;;  %v1158_v5 = vshll.u32 %v1077_v24, 16  ;;  %v1395_v56 = vld [vmem:[#allocation2 + $0x40] sm:$0xf] }
 0x114   : > { %v3000_v26 = vcombine.low %v1075_v62, %v1077_v24  ;;  %v3007_v29 = vcombine.low %v1122_v4, %v1135_v63  ;;  %v1183_v16 = vrot.slane %v1181_v9, 7  ;;  %v1428_v44 = vsel %vm3454_vm3, %v1423_v23, %v3642_v43  ;;  %v3917_v9 = vld [vmem:[#allocation2 + $0x28] sm:$0xf]  ;;  %v3923_v24 = vld [vmem:[#allocation2 + $0x34] sm:$0xf] }
 0x115   : > { %v1437_v19 = vrot.slane %v1436_v46, 4  ;;  %v1451_v3 = vrot.slane %v1450_v34, 4  ;;  %v1157_v54 = vrot.slane %v1155_v6, 7  ;;  %v4320_v36 = vsel %vm3454_vm3, %v3638_v41, %v3640_v42  ;;  %v2522_v27 = vld [vmem:[#allocation2 + $0x64] sm:$0xf] }
 0x116   : > { %3219 = vmatprep.mubr.msk.bf16.mxu0 %vm1211_vm11, %v3000_v26  ;;  %3226 = vmatmul.mubr.msk.bf16.vlgmr.msra.gmra.mxu1 %vm1211_vm11, %v3007_v29  ;;  %v3015_v62 = vcombine.low %v4320_v36, %v1428_v44  ;;  %v1639_v63 = vrot.slane %v1637_v8, 7  ;;  %v1640_v17 = vshll.u32 %v3874_v15, 16  ;;  %v1079_v55 = vld [vmem:[#allocation2 + $0x4c] sm:$0xf]  ;;  %v1186_v43 = vor.u32 %v1184_v60, %v1183_v16 }
 0x117   : > { %3244 = vmatpush3.bf16.msra.mxu1 %v3634_v38  ;;  %v1442_v11 = vsel %vm3454_vm3, %v1437_v19, %v3658_v52  ;;  %v1456_v28 = vsel %vm3454_vm3, %v1451_v3, %v3652_v31  ;;  %v1650_v40 = vshrl.u32 %v3886_v39, 16  ;;  %v1168_v41 = vshrl.u32 %v1079_v55, 16  ;;  %v1397_v26 = vld [vmem:[#allocation2 + $0x4c] sm:$0xf]  ;;  %v1399_v19 = vld [vmem:[#allocation2 + $0x58] sm:$0xf] }
 0x118   : > { %v1171_v42 = vshll.u32 %v1079_v55, 16  ;;  %v3001_v37 = vcombine.low %v1079_v55, %v1081_v0  ;;  %v1160_v21 = vor.u32 %v1158_v5, %v1157_v54  ;;  %3318 = vmatprep.subr.msk.bf16.mxu1 %vm1224_vm8, %v3680_v10  ;;  %v1187_v38 = vsel %vm3763_vm10, %v3650_v49, %v1186_v43 }
 0x119   : > { %v3016_v52 = vcombine.low %v1442_v11, %v1456_v28  ;;  %v1642_v47 = vor.u32 %v1640_v17, %v1639_v63  ;;  %v1652_v61 = vrot.slane %v1650_v40, 7  ;;  %v1170_v12 = vrot.slane %v1168_v41, 7 }
 0x11a   : > { %3220 = vmatmul.mubr.msk.bf16.gmra.mxu0 %vm1211_vm11, %v3001_v37  ;;  %v1161_v31 = vsel %vm3763_vm10, %v3648_v48, %v1160_v21  ;;  %v1653_v0 = vshll.u32 %v3886_v39, 16  ;;  %v1458_v59 = vshrl.u32 %v1393_v14, 16  ;;  %v1461_v60 = vshll.u32 %v1393_v14, 16  ;;  %v3941_v21 = vld [vmem:[#allocation2 + $0x50] sm:$0x1] }
 0x11b   : > { %3235 = vmatprep.mubr.msk.bf16.mxu0 %vm1211_vm11, %v3015_v62  ;;  %v3008_v10 = vcombine.low %v1148_v1, %v1161_v31  ;;  %v1643_v49 = vsel %vm3763_vm10, %v3654_v50, %v1642_v47  ;;  %v1472_v23 = vshrl.u32 %v1395_v56, 16  ;;  %v1173_v4 = vor.u32 %v1171_v42, %v1170_v12  ;;  %v4322_v47 = vld [vmem:[#allocation7_spill] sm:$0xff]  ;;  %v3950_v31 = vld [vmem:[#allocation2 + $0x4c] sm:$0xf] }
 0x11c   : > { %v1655_v46 = vor.u32 %v1653_v0, %v1652_v61  ;;  %v1460_v34 = vrot.slane %v1458_v59, 4  ;;  %v1475_v48 = vshll.u32 %v1395_v56, 16  ;;  %v1463_v8 = vrot.slane %v1461_v60, 5  ;;  %v4323_v0 = vld [vmem:[#allocation10_spill] sm:$0xff] }
 0x11d   : > { %3229 = vmatprep.mubr.msk.bf16.mxu1 %vm1211_vm11, %v3008_v10  ;;  %v1474_v6 = vrot.slane %v1472_v23, 4  ;;  %v1663_v5 = vshrl.u32 %v3917_v9, 16  ;;  %v1666_v1 = vshll.u32 %v3917_v9, 16  ;;  %v1174_v50 = vsel %vm3763_vm10, %v3656_v51, %v1173_v4  ;;  %v4324_v10 = vld [vmem:[#allocation8_spill] sm:$0xff]  ;;  %v3959_v23 = vld [vmem:[#allocation2 + $0x58] sm:$0xf] }
 0x11e   : > { %v1656_v29 = vsel %vm3763_vm10, %v3660_v53, %v1655_v46  ;;  %v1477_v16 = vrot.slane %v1475_v48, 5  ;;  %v1676_v44 = vshrl.u32 %v3923_v24, 16  ;;  %v3009_v3 = vcombine.low %v1174_v50, %v1187_v38  ;;  %v3937_v53 = vld [vmem:[#allocation2 + $0x40] sm:$0xf]  ;;  %v4321_v38 = vld [vmem:[#allocation9_spill] sm:$0xff]  ;;  %v4325_v4 = vld [vmem:[#allocation15_spill] sm:$0xff] }
 0x11f   : > { %v3032_v54 = vcombine.low %v1643_v49, %v1656_v29  ;;  %v1464_v36 = vor.u32 %v1463_v8, %v1460_v34  ;;  %v1665_v62 = vrot.slane %v1663_v5, 7  ;;  %v1679_v55 = vshll.u32 %v3923_v24, 16  ;;  %v3963_v8 = vld [vmem:[#allocation2 + $0x64] sm:$0xf] }
 0x120   : > { %v1478_v63 = vor.u32 %v1477_v16, %v1474_v6  ;;  %v1678_v17 = vrot.slane %v1676_v44, 7  ;;  %v1486_v43 = vshrl.u32 %v1397_v26, 16  ;;  %3230 = vmatmul.mubr.msk.bf16.gmra.mxu1 %vm1211_vm11, %v3009_v3  ;;  %v1489_v28 = vshll.u32 %v1397_v26, 16 }
 0x121   : > { %v1465_v51 = vrot.slane %v1464_v36, 4  ;;  %v1668_v11 = vor.u32 %v1666_v1, %v1665_v62  ;;  %v1500_v40 = vshrl.u32 %v1399_v19, 16  ;;  %3245 = vmatprep.mubr.msk.bf16.mxu1 %vm1211_vm11, %v3032_v54  ;;  %v1503_v37 = vshll.u32 %v1399_v19, 16 }
 0x122   : > { %3236 = vmatmul.mubr.msk.bf16.vlgmr.msra.gmra.mxu0 %vm1211_vm11, %v3016_v52  ;;  %v1479_v14 = vrot.slane %v1478_v63, 4  ;;  %v1681_v41 = vor.u32 %v1679_v55, %v1678_v17  ;;  %v1488_v42 = vrot.slane %v1486_v43, 4  ;;  %v1491_v12 = vrot.slane %v1489_v28, 5  ;;  %v1947_v63 = vld [vmem:[#allocation2 + $0x10] sm:$0xf]  ;;  %v4326_v17 = vld [vmem:[#allocation16_spill] sm:$0xff] }
 0x123   : > { %v1470_v56 = vsel %vm3454_vm3, %v1465_v51, %v3682_v20  ;;  %3254 = vmatpush3.bf16.msra.mxu0 %v4321_v38  ;;  %v1669_v61 = vsel %vm3763_vm10, %v4322_v47, %v1668_v11  ;;  %v1502_v52 = vrot.slane %v1500_v40, 4  ;;  %v1505_v60 = vrot.slane %v1503_v37, 5  ;;  %v4328_v28 = vld [vmem:[#allocation13_spill] sm:$0xff] }
 0x124   : > { %v1484_v59 = vsel %vm3454_vm3, %v1479_v14, %v4323_v0  ;;  %v1682_v49 = vsel %vm3763_vm10, %v4324_v10, %v1681_v41  ;;  %v1689_v20 = vshrl.u32 %v3937_v53, 16  ;;  %3319 = vmatprep.subr.msk.bf16.mxu0 %vm1224_vm8, %v4325_v4  ;;  %v1492_v48 = vor.u32 %v1491_v12, %v1488_v42  ;;  %v4329_v14 = vld [vmem:[#allocation12_spill] sm:$0xff] }
 0x125   : > { %v3017_v46 = vcombine.low %v1470_v56, %v1484_v59  ;;  %v3033_v34 = vcombine.low %v1669_v61, %v1682_v49  ;;  %v2592_v6 = vshll.u32 %v3941_v21, 16  ;;  %v1506_v5 = vor.u32 %v1505_v60, %v1502_v52  ;;  %v4330_v12 = vld [vmem:[#allocation20_spill] sm:$0xff]  ;;  %v4331_v52 = vld [vmem:[#allocation17_spill] sm:$0xff] }
 0x126   : > { %v1691_v1 = vrot.slane %v1689_v20, 7  ;;  %v1692_v26 = vshll.u32 %v3937_v53, 16  ;;  %v1702_v50 = vshrl.u32 %v3950_v31, 16  ;;  %v1493_v29 = vrot.slane %v1492_v48, 4  ;;  %v1951_v60 = vld [vmem:[#allocation2 + $0x28] sm:$0xf] }
 0x127   : > { %3239 = vmatprep.mubr.msk.bf16.mxu0 %vm1211_vm11, %v3017_v46  ;;  %v1705_v16 = vshll.u32 %v3950_v31, 16  ;;  %v3041_v44 = vcombine.low %v3874_v15, %v3886_v39  ;;  %v1715_v19 = vshrl.u32 %v3959_v23, 16  ;;  %v1507_v3 = vrot.slane %v1506_v5, 4  ;;  %v1949_v15 = vld [vmem:[#allocation2 + $0x1c] sm:$0xf]  ;;  %v4332_v5 = vld [vmem:[#allocation14_spill] sm:$0xff] }
 0x128   : > { %v1694_v54 = vor.u32 %v1692_v26, %v1691_v1  ;;  %v1704_v36 = vrot.slane %v1702_v50, 7  ;;  %v1728_v62 = vshrl.u32 %v3963_v8, 16  ;;  %3246 = vmatmul.mubr.msk.bf16.vlgmr.msra.gmra.mxu1 %vm1211_vm11, %v3033_v34  ;;  %v1498_v55 = vsel %vm3454_vm3, %v1493_v29, %v4326_v17  ;;  %v4327_v39 = vld [vmem:[#allocation11_spill] sm:$0xff]  ;;  %v1953_v48 = vld [vmem:[#allocation2 + $0x34] sm:$0xf] }
 0x129   : > { %v1717_v43 = vrot.slane %v1715_v19, 7  ;;  %v1718_v51 = vshll.u32 %v3959_v23, 16  ;;  %v1731_v11 = vshll.u32 %v3963_v8, 16  ;;  %3264 = vmatpush3.bf16.msra.mxu1 %v4327_v39  ;;  %v1512_v40 = vsel %vm3454_vm3, %v1507_v3, %v4328_v28  ;;  %v4333_v26 = vld [vmem:[#allocation18_spill] sm:$0xff]  ;;  %v1955_v19 = vld [vmem:[#allocation2 + $0x40] sm:$0xf] }
 0x12a   : > { %v1695_v41 = vsel %vm3763_vm10, %v4329_v14, %v1694_v54  ;;  %v1707_v42 = vor.u32 %v1705_v16, %v1704_v36  ;;  %v1730_v37 = vrot.slane %v1728_v62, 7  ;;  %v3018_v56 = vcombine.low %v1498_v55, %v1512_v40  ;;  %3320 = vmatprep.subr.msk.bf16.mxu1 %vm1224_vm8, %v4330_v12  ;;  %v1957_v17 = vld [vmem:[#allocation2 + $0x4c] sm:$0xf]  ;;  %v4006_v14 = vld [vmem:[#allocation2 + $0x1c] sm:$0xf] }
 0x12b   : > { %v1720_v38 = vor.u32 %v1718_v51, %v1717_v43  ;;  %v1964_v47 = vshrl.u32 %v1947_v63, 16  ;;  %v1967_v61 = vshll.u32 %v1947_v63, 16  ;;  %v1978_v10 = vshrl.u32 %v1949_v15, 16 }
 0x12c   : > { %v1708_v0 = vsel %vm3763_vm10, %v4331_v52, %v1707_v42  ;;  %v1733_v59 = vor.u32 %v1731_v11, %v1730_v37  ;;  %v1981_v49 = vshll.u32 %v1949_v15, 16  ;;  %3240 = vmatmul.mubr.msk.bf16.gmra.mxu0 %vm1211_vm11, %v3018_v56  ;;  %v3042_v4 = vcombine.low %v3917_v9, %v3923_v24  ;;  %v4335_v56 = vld [vmem:[#allocation21_spill] sm:$0xff] }
 0x12d   : > { %v3034_v20 = vcombine.low %v1695_v41, %v1708_v0  ;;  %v1966_v46 = vrot.slane %v1964_v47, 4  ;;  %v1969_v34 = vrot.slane %v1967_v61, 5  ;;  %3255 = vmatprep.mubr.msk.bf16.mxu0 %vm1211_vm11, %v3041_v44  ;;  %v1721_v1 = vsel %vm3763_vm10, %v4332_v5, %v1720_v38  ;;  %v4334_v41 = vld [vmem:[#allocation19_spill] sm:$0xff]  ;;  %v4014_v52 = vld [vmem:[#allocation2 + $0x28] sm:$0xf] }
 0x12e   : > { %v1734_v50 = vsel %vm3763_vm10, %v4333_v26, %v1733_v59  ;;  %v1980_v29 = vrot.slane %v1978_v10, 4  ;;  %v1983_v16 = vrot.slane %v1981_v49, 5  ;;  %v1992_v24 = vshrl.u32 %v1951_v60, 16 }
 0x12f   : > { %3249 = vmatprep.mubr.msk.bf16.mxu1 %vm1211_vm11, %v3034_v20  ;;  %v3035_v3 = vcombine.low %v1721_v1, %v1734_v50  ;;  %v1970_v9 = vor.u32 %v1969_v34, %v1966_v46  ;;  %v1995_v54 = vshll.u32 %v1951_v60, 16  ;;  %v3043_v44 = vcombine.low %v3937_v53, %v3950_v31  ;;  %v1959_v60 = vld [vmem:[#allocation2 + $0x58] sm:$0xf]  ;;  %v4336_v20 = vld [vmem:[#allocation22_spill] sm:$0xff] }
 0x130   : > { %v1984_v36 = vor.u32 %v1983_v16, %v1980_v29  ;;  %v2006_v62 = vshrl.u32 %v1953_v48, 16  ;;  %v2009_v63 = vshll.u32 %v1953_v48, 16  ;;  %v1994_v43 = vrot.slane %v1992_v24, 4  ;;  %v4337_v1 = vld [vmem:[#allocation23_spill] sm:$0xff]  ;;  %v1961_v16 = vld [vmem:[#allocation2 + $0x64] sm:$0xf] }
 0x131   : > { %3250 = vmatmul.mubr.msk.bf16.gmra.mxu1 %vm1211_vm11, %v3035_v3  ;;  %v1971_v55 = vrot.slane %v1970_v9, 4  ;;  %v1997_v51 = vrot.slane %v1995_v54, 5  ;;  %v2020_v11 = vshrl.u32 %v1955_v19, 16  ;;  %v2023_v40 = vshll.u32 %v1955_v19, 16  ;;  %v4338_v19 = vld [vmem:[#allocation25_spill] sm:$0xff] }
 0x132   : > { %v1985_v15 = vrot.slane %v1984_v36, 4  ;;  %v2008_v39 = vrot.slane %v2006_v62, 4  ;;  %v2011_v28 = vrot.slane %v2009_v63, 5  ;;  %v2034_v37 = vshrl.u32 %v1957_v17, 16 }
 0x133   : > { %v1976_v42 = vsel %vm3454_vm3, %v1971_v55, %v4334_v41  ;;  %v1998_v53 = vor.u32 %v1997_v51, %v1994_v43  ;;  %v2022_v31 = vrot.slane %v2020_v11, 4  ;;  %v2025_v61 = vrot.slane %v2023_v40, 5  ;;  %v4037_v55 = vld [vmem:[%s4270_s5] sm:$0xff]  }
 0x134   : > { %v1990_v38 = vsel %vm3454_vm3, %v1985_v15, %v4335_v56  ;;  %v2012_v47 = vor.u32 %v2011_v28, %v2008_v39  ;;  %v2037_v12 = vshll.u32 %v1957_v17, 16  ;;  %3256 = vmatmul.mubr.msk.bf16.vlgmr.msra.gmra.mxu0 %vm1211_vm11, %v3042_v4  ;;  %v2036_v10 = vrot.slane %v2034_v37, 4  ;;  %v4032_v17 = vld [vmem:[#allocation2 + $0x34] sm:$0xf] }
 0x135   : > { %v3050_v0 = vcombine.low %v1976_v42, %v1990_v38  ;;  %v1999_v59 = vrot.slane %v1998_v53, 4  ;;  %v2200_v49 = vshrl.u32 %v4006_v14, 16  ;;  %3259 = vmatprep.mubr.msk.bf16.mxu0 %vm1211_vm11, %v3043_v44  ;;  %3274 = vmatpush3.bf16.msra.mxu0 %v4336_v20  ;;  %v2026_v34 = vor.u32 %v2025_v61, %v2022_v31  ;;  %v4339_v15 = vld [vmem:[#allocation26_spill] sm:$0xff]  ;;  %v4045_v42 = vld [vmem:[#allocation2 + $0x40] sm:$0xf]  ;;  %v4340_v53 = vld [vmem:[#allocation27_spill] sm:$0xff] }
 0x136   : > { %v2013_v46 = vrot.slane %v2012_v47, 4  ;;  %v2039_v48 = vrot.slane %v2037_v12, 5  ;;  %v2203_v5 = vshll.u32 %v4006_v14, 16  ;;  %v2213_v50 = vshrl.u32 %v4014_v52, 16  ;;  %3321 = vmatprep.subr.msk.bf16.mxu0 %vm1224_vm8, %v3822_v25  ;;  %v4341_v31 = vld [vmem:[#allocation28_spill] sm:$0xff] }
 0x137   : > { %3265 = vmatprep.mubr.msk.bf16.mxu1 %vm1211_vm11, %v3050_v0  ;;  %v2004_v4 = vsel %vm3454_vm3, %v1999_v59, %v4337_v1  ;;  %v2202_v26 = vrot.slane %v2200_v49, 7  ;;  %v2216_v29 = vshll.u32 %v4014_v52, 16  ;;  %v2027_v9 = vrot.slane %v2026_v34, 4  ;;  %v4055_v38 = vld [vmem:[#allocation2 + $0x4c] sm:$0xf]  ;;  %v4342_v61 = vld [vmem:[#allocation24_spill] sm:$0xff] }
 0x138   : > { %v2018_v3 = vsel %vm3454_vm3, %v2013_v46, %v4338_v19  ;;  %v2040_v24 = vor.u32 %v2039_v48, %v2036_v10  ;;  %v2048_v54 = vshrl.u32 %v1959_v60, 16  ;;  %v2215_v62 = vrot.slane %v2213_v50, 7  ;;  %v4061_v10 = vld [vmem:[#allocation2 + $0x58] sm:$0xf] }
 0x139   : > { %v3051_v36 = vcombine.low %v2004_v4, %v2018_v3  ;;  %v2205_v44 = vor.u32 %v2203_v5, %v2202_v26  ;;  %v2051_v63 = vshll.u32 %v1959_v60, 16  ;;  %v3044_v25 = vcombine.low %v3959_v23, %v3963_v8 }
 0x13a   : > { %v2041_v43 = vrot.slane %v2040_v24, 4  ;;  %v2050_v51 = vrot.slane %v2048_v54, 4  ;;  %v2062_v11 = vshrl.u32 %v1961_v16, 16  ;;  %v2218_v28 = vor.u32 %v2216_v29, %v2215_v62  ;;  %v4073_v29 = vld [vmem:[#allocation2 + $0x64] sm:$0xf]  ;;  %v4343_v24 = vld [vmem:[#allocation29_spill] sm:$0xff] }
 0x13b   : > { %3266 = vmatmul.mubr.msk.bf16.vlgmr.msra.gmra.mxu1 %vm1211_vm11, %v3051_v36  ;;  %v2206_v39 = vsel %vm3763_vm10, %v4339_v15, %v2205_v44  ;;  %v2053_v40 = vrot.slane %v2051_v63, 5  ;;  %v2065_v41 = vshll.u32 %v1961_v16, 16  ;;  %v2032_v23 = vsel %vm3454_vm3, %v2027_v9, %v4341_v31 }
 0x13c   : > { %3284 = vmatpush3.bf16.msra.mxu1 %v4340_v53  ;;  %v2046_v8 = vsel %vm3454_vm3, %v2041_v43, %v3787_v7  ;;  %v2064_v37 = vrot.slane %v2062_v11, 4  ;;  %v2226_v56 = vshrl.u32 %v4032_v17, 16  ;;  %3260 = vmatmul.mubr.msk.bf16.gmra.mxu0 %vm1211_vm11, %v3044_v25  ;;  %v2219_v12 = vsel %vm3763_vm10, %v4342_v61, %v2218_v28  ;;  %v2512_v43 = vld [vmem:[#allocation2 + $0x28] sm:$0xf]  ;;  %v2514_v53 = vld [vmem:[#allocation2 + $0x34] sm:$0xf] }
 0x13d   : > { %v3052_v47 = vcombine.low %v2032_v23, %v2046_v8  ;;  %v2054_v0 = vor.u32 %v2053_v40, %v2050_v51  ;;  %v2067_v59 = vrot.slane %v2065_v41, 5  ;;  %3303 = vmatprep.subr.bf16.mxu1 %v4037_v55  ;;  %v3067_v49 = vcombine.low %v2206_v39, %v2219_v12  ;;  %v2516_v23 = vld [vmem:[#allocation2 + $0x40] sm:$0xf] }
 0x13e   : > { %v2228_v7 = vrot.slane %v2226_v56, 7  ;;  %v2229_v60 = vshll.u32 %v4032_v17, 16  ;;  %v2239_v20 = vshrl.u32 %v4045_v42, 16  ;;  %v2242_v48 = vshll.u32 %v4045_v42, 16 }
 0x13f   : > { %3269 = vmatprep.mubr.msk.bf16.mxu1 %vm1211_vm11, %v3052_v47  ;;  %v2055_v46 = vrot.slane %v2054_v0, 4  ;;  %v2068_v34 = vor.u32 %v2067_v59, %v2064_v37  ;;  %v2252_v5 = vshrl.u32 %v4055_v38, 16  ;;  %3275 = vmatprep.mubr.msk.bf16.mxu0 %vm1211_vm11, %v3067_v49  ;;  %v3076_v26 = vcombine.low %v4006_v14, %v4014_v52  ;;  %v2510_v52 = vld [vmem:[#allocation2 + $0x1c] sm:$0xf]  ;;  %v2518_v0 = vld [vmem:[#allocation2 + $0x4c] sm:$0xf] }
 0x140   : > { %v2231_v1 = vor.u32 %v2229_v60, %v2228_v7  ;;  %v2241_v4 = vrot.slane %v2239_v20, 7  ;;  %v2265_v50 = vshrl.u32 %v4061_v10, 16  ;;  %v2255_v9 = vshll.u32 %v4055_v38, 16  ;;  %v4344_v59 = vld [vmem:[#allocation30_spill] sm:$0xff] }
 0x141   : > { %v2060_v16 = vsel %vm3454_vm3, %v2055_v46, %v3792_v35  ;;  %v2069_v19 = vrot.slane %v2068_v34, 4  ;;  %v2254_v3 = vrot.slane %v2252_v5, 7  ;;  %v2268_v14 = vshll.u32 %v4061_v10, 16  ;;  %v2520_v46 = vld [vmem:[#allocation2 + $0x58] sm:$0xf] }
 0x142   : > { %v2232_v54 = vsel %vm3763_vm10, %v4343_v24, %v2231_v1  ;;  %v2244_v36 = vor.u32 %v2242_v48, %v2241_v4  ;;  %v2267_v44 = vrot.slane %v2265_v50, 7  ;;  %v3077_v35 = vcombine.low %v4032_v17, %v4045_v42 }
 0x143   : > { %v2074_v62 = vsel %vm3454_vm3, %v2069_v19, %v3800_v18  ;;  %v2257_v63 = vor.u32 %v2255_v9, %v2254_v3  ;;  %v2278_v25 = vshrl.u32 %v4073_v29, 16  ;;  %v2281_v39 = vshll.u32 %v4073_v29, 16 }
 0x144   : > { %v3053_v51 = vcombine.low %v2060_v16, %v2074_v62  ;;  %v2245_v11 = vsel %vm3763_vm10, %v3796_v2, %v2244_v36  ;;  %v2270_v15 = vor.u32 %v2268_v14, %v2267_v44  ;;  %v2527_v41 = vshrl.u32 %v2510_v52, 16  ;;  %v2525_v62 = vld [vmem:[#allocation2 + $0x74] sm:$0x1] }
 0x145   : > { %v3068_v28 = vcombine.low %v2232_v54, %v2245_v11  ;;  %v2258_v18 = vsel %vm3763_vm10, %v3804_v22, %v2257_v63  ;;  %v2280_v40 = vrot.slane %v2278_v25, 7  ;;  %v2530_v42 = vshll.u32 %v2510_v52, 16  ;;  %v2523_v52 = vld [vmem:[#allocation2 + $0x68] sm:$0x1] }
 0x146   : > { %3270 = vmatmul.mubr.msk.bf16.gmra.mxu1 %vm1211_vm11, %v3053_v51  ;;  %v2271_v17 = vsel %vm3763_vm10, %v3794_v45, %v2270_v15  ;;  %v2541_v31 = vshrl.u32 %v2512_v43, 16  ;;  %v2544_v2 = vshll.u32 %v2512_v43, 16  ;;  %v3078_v22 = vcombine.low %v4055_v38, %v4061_v10 }
 0x147   : > { %3276 = vmatmul.mubr.msk.bf16.vlgmr.msra.gmra.mxu0 %vm1211_vm11, %v3068_v28  ;;  %3285 = vmatprep.mubr.msk.bf16.mxu1 %vm1211_vm11, %v3076_v26  ;;  %v3069_v8 = vcombine.low %v2258_v18, %v2271_v17  ;;  %v2283_v37 = vor.u32 %v2281_v39, %v2280_v40  ;;  %v2529_v56 = vrot.slane %v2527_v41, 4  ;;  %v2532_v47 = vrot.slane %v2530_v42, 5  ;;  %v4346_v28 = vld [vmem:[#allocation33_spill] sm:$0xff]  ;;  %v4348_v41 = vld [vmem:[#allocation35_spill] sm:$0xff] }
 0x148   : > { %3294 = vmatpush3.bf16.msra.mxu0 %v3830_v57  ;;  %v2543_v61 = vrot.slane %v2541_v31, 4  ;;  %v2546_v12 = vrot.slane %v2544_v2, 5  ;;  %v2555_v45 = vshrl.u32 %v2514_v53, 16  ;;  %v2558_v7 = vshll.u32 %v2514_v53, 16  ;;  %v3357_v31 = vld [vmem:[#allocation2 + $0x70] sm:$0xf] }
 0x149   : > { %3279 = vmatprep.mubr.msk.bf16.mxu0 %vm1211_vm11, %v3069_v8  ;;  %v2284_v49 = vsel %vm3763_vm10, %v4344_v59, %v2283_v37  ;;  %v2569_v60 = vshrl.u32 %v2516_v23, 16  ;;  %v2572_v20 = vshll.u32 %v2516_v23, 16  ;;  %v4345_v57 = vsel %vm3763_vm10, %v3808_v30, %v3813_v32  ;;  %v4349_v23 = vld [vmem:[#allocation31_spill] sm:$0xff] }
 0x14a   : > { %v3070_v38 = vcombine.low %v2284_v49, %v4345_v57  ;;  %v2533_v10 = vor.u32 %v2532_v47, %v2529_v56  ;;  %v2547_v34 = vor.u32 %v2546_v12, %v2543_v61  ;;  %v2557_v48 = vrot.slane %v2555_v45, 4  ;;  %v4350_v47 = vld [vmem:[#allocation32_spill] sm:$0xff]  ;;  %v4351_v49 = vld [vmem:[#allocation3_spill] sm:$0xff]  ;;  %v4353_v57 = vld [vmem:[#allocation5_spill] sm:$0xff] }
 0x14b   : > { %v2560_v5 = vrot.slane %v2558_v7, 5  ;;  %v2571_v1 = vrot.slane %v2569_v60, 4  ;;  %v2574_v4 = vrot.slane %v2572_v20, 5  ;;  %v2583_v26 = vshrl.u32 %v2518_v0, 16 }
 0x14c   : > { %v2534_v50 = vrot.slane %v2533_v10, 4  ;;  %v2548_v16 = vrot.slane %v2547_v34, 4  ;;  %v2586_v19 = vshll.u32 %v2518_v0, 16  ;;  %v2597_v3 = vshrl.u32 %v2520_v46, 16 }
 0x14d   : > { %v2561_v9 = vor.u32 %v2560_v5, %v2557_v48  ;;  %v2575_v24 = vor.u32 %v2574_v4, %v2571_v1  ;;  %v2585_v54 = vrot.slane %v2583_v26, 4  ;;  %v2600_v36 = vshll.u32 %v2520_v46, 16  ;;  %v4352_v46 = vld [vmem:[#allocation4_spill] sm:$0xff] }
 0x14e   : > { %3286 = vmatmul.mubr.msk.bf16.vlgmr.msra.gmra.mxu1 %vm1211_vm11, %v3077_v35  ;;  %v2539_v30 = vsel %vm3454_vm3, %v2534_v50, %v3836_v58  ;;  %v2553_v32 = vsel %vm3454_vm3, %v2548_v16, %v3839_v13  ;;  %v2588_v44 = vrot.slane %v2586_v19, 5  ;;  %v2599_v14 = vrot.slane %v2597_v3, 4 }
 0x14f   : > { %3304 = vmatpush3.bf16.msra.mxu1 %v4037_v55  ;;  %3280 = vmatmul.mubr.msk.bf16.gmra.mxu0 %vm1211_vm11, %v3070_v38  ;;  %v3085_v63 = vcombine.low %v2539_v30, %v2553_v32  ;;  %v2576_v25 = vrot.slane %v2575_v24, 4  ;;  %v2594_v35 = vrot.slane %v2592_v6, 5  ;;  %v2602_v43 = vrot.slane %v2600_v36, 5  ;;  %v4347_v55 = vld [vmem:[#allocation34_spill] sm:$0xff] }
 0x150   : > { %3289 = vmatprep.mubr.msk.bf16.mxu1 %vm1211_vm11, %v3078_v22  ;;  %v2562_v58 = vrot.slane %v2561_v9, 4  ;;  %v2589_v51 = vor.u32 %v2588_v44, %v2585_v54  ;;  %v2611_v11 = vshrl.u32 %v2522_v27, 16  ;;  %v2614_v13 = vshll.u32 %v2522_v27, 16  ;;  %v4354_v38 = vld [vmem:[#allocation6_spill] sm:$0xff] }
 0x151   : > { %3295 = vmatprep.mubr.msk.bf16.mxu0 %vm1211_vm11, %v3085_v63  ;;  %v2603_v15 = vor.u32 %v2602_v43, %v2599_v14  ;;  %v2620_v39 = vshll.u32 %v2523_v52, 16  ;;  %v2631_v18 = vor.u32 %v4347_v55, %v4346_v28  ;;  %v2634_v40 = vshll.u32 %v2525_v62, 16 }
 0x152   : > { %v2581_v21 = vsel %vm3454_vm3, %v2576_v25, %v4348_v41  ;;  %v2590_v6 = vrot.slane %v2589_v51, 4  ;;  %v2613_v53 = vrot.slane %v2611_v11, 4  ;;  %v2616_v17 = vrot.slane %v2614_v13, 5 }
 0x153   : > { %v2604_v42 = vrot.slane %v2603_v15, 4  ;;  %v3079_v2 = vcombine.low %v4073_v29, %v3357_v31  ;;  %v2567_v8 = vsel %vm3454_vm3, %v2562_v58, %v4349_v23  ;;  %v2622_v12 = vrot.slane %v2620_v39, 5 }
 0x154   : > { %v2595_v37 = vsel %vm3454_vm3, %v2590_v6, %v2594_v35  ;;  %v2617_v22 = vor.u32 %v2616_v17, %v2613_v53  ;;  %v3086_v56 = vcombine.low %v2567_v8, %v2581_v21  ;;  %v2632_v59 = vrot.slane %v2631_v18, 4 }
 0x155   : > { %v2609_v61 = vsel %vm3454_vm3, %v2604_v42, %v4350_v47  ;;  %v2636_v29 = vrot.slane %v2634_v40, 5 }
 0x156   : > { %3290 = vmatmul.mubr.msk.bf16.gmra.mxu1 %vm1211_vm11, %v3079_v2  ;;  %v3087_v45 = vcombine.low %v2595_v37, %v2609_v61  ;;  %v2618_v0 = vrot.slane %v2617_v22, 4 }
 0x157   : > { %3296 = vmatmul.mubr.msk.bf16.vlgmr.msra.gmra.mxu0 %vm1211_vm11, %v3086_v56  ;;  %3305 = vmatprep.mubr.msk.bf16.mxu1 %vm434_vm0, %v4351_v49  ;;  %v2637_v60 = vsel %vm3454_vm3, %v2632_v59, %v2636_v29 }
 0x158   : > { %3299 = vmatprep.mubr.msk.bf16.mxu0 %vm1211_vm11, %v3087_v45  ;;  %v2623_v7 = vsel %vm3454_vm3, %v2618_v0, %v2622_v12 }
 0x159   : > { %v3088_v20 = vcombine.low %v2623_v7, %v2637_v60 }
 0x15e   : > { %3306 = vmatmul.mubr.msk.bf16.vlgmr.msra.gmra.mxu1 %vm434_vm0, %v4352_v46 }
 0x15f   : > { %3300 = vmatmul.mubr.msk.bf16.gmra.mxu0 %vm1211_vm11, %v3088_v20  ;;  %3309 = vmatprep.mubr.msk.bf16.mxu1 %vm434_vm0, %v4353_v57 }
 0x166   : > { %3310 = vmatmul.mubr.msk.bf16.gmra.mxu1 %vm434_vm0, %v4354_v38 }
 0x1ce   : > { %v3217_v10 = vpop.f32.mrf.mxu0 }
 0x1d0   : > { %v1262_v34 = vpop.f32.mrf.mxu0 }
 0x1d2   : > { %v3218_v48 = vpop.f32.mrf.mxu0 }
 0x1d4   : > { %v1265_v5 = vpop.f32.mrf.mxu0 }
 0x1d6   : > { %v3227_v1 = vpop.f32.mrf.mxu1 }
 0x1d7   : > { %v1363_v61 = vadd.f32 %v3227_v1, %v3217_v10 }
 0x1d8   : > { %v1354_v4 = vpop.f32.mrf.mxu1 }
 0x1d9   : > { %v1355_v0 = vadd.f32 %v1354_v4, %v1262_v34 }
 0x1da   : > { %v3221_v33 = vpop.f32.mrf.mxu0  ;;  %v3228_v26 = vpop.f32.mrf.mxu1 }
 0x1db   : > { %v1366_v7 = vadd.f32 %v3228_v26, %v3218_v48 }
 0x1dc   : > { %v4157_v50 = vpop.f32.mrf.mxu0  ;;  %v1357_v16 = vpop.f32.mrf.mxu1 }
 0x1dd   : > { %v1358_v38 = vadd.f32 %v1357_v16, %v1265_v5 }
 0x1de   : > { %v4159_v19 = vpop.f32.mrf.mxu0 }
 0x1e0   : > { %v4161_v3 = vpop.f32.mrf.mxu0  ;;  %v3231_v9 = vpop.f32.mrf.mxu1 }
 0x1e2   : > { %v3237_v24 = vpop.f32.mrf.mxu0  ;;  %v1370_v54 = vpop.f32.mrf.mxu1 }
 0x1e3   : > { %v1609_v59 = vadd.f32 %v3237_v24, %v1363_v61  ;;  %v1371_v48 = vadd.f32 %v1370_v54, %v4157_v50 }
 0x1e4   : > { %v1576_v36 = vpop.f32.mrf.mxu0  ;;  %v4163_v27 = vpop.f32.mrf.mxu1 }
 0x1e5   : > { %v1607_v60 = vadd.f32 %v1576_v36, %v1355_v0 }
 0x1e6   : > { %v3238_v30 = vpop.f32.mrf.mxu0  ;;  %v4165_v32 = vpop.f32.mrf.mxu1 }
 0x1e7   : > { %v1374_v50 = vadd.f32 %v4165_v32, %v4161_v3  ;;  %v4208_v3 = vld [vmem:[%s4269_s4] ss:$0 sm:$0xff] }
 0x1e8   : > { %v1579_v44 = vpop.f32.mrf.mxu0  ;;  %v3247_v14 = vpop.f32.mrf.mxu1 }
 0x1e9   : > { %v1831_v20 = vadd.f32 %v3247_v14, %v1609_v59  ;;  %v1608_v1 = vadd.f32 %v1579_v44, %v1358_v38 }
 0x1ea   : > { %v1798_v52 = vpop.f32.mrf.mxu1 }
 0x1ec   : > { %v3241_v62 = vpop.f32.mrf.mxu0  ;;  %v3248_v63 = vpop.f32.mrf.mxu1 }
 0x1ee   : > { %v1592_v25 = vpop.f32.mrf.mxu0  ;;  %v1801_v35 = vpop.f32.mrf.mxu1 }
 0x1ef   : > { %v1830_v14 = vadd.f32 %v1801_v35, %v1608_v1 }
 0x1f0   : > { %v4167_v43 = vpop.f32.mrf.mxu0 }
 0x1f1   : > { %v3251_v58 = vpop.f32.mrf.mxu1 }
 0x1f2   : > { %v4169_v51 = vpop.f32.mrf.mxu0 }
 0x1f3   : > { %v4171_v11 = vpop.f32.mrf.mxu1 }
 0x1f4   : > { %v3257_v13 = vpop.f32.mrf.mxu0 }
 0x1f5   : > { %v4173_v15 = vpop.f32.mrf.mxu1 }
 0x1f6   : > { %v1908_v39 = vpop.f32.mrf.mxu0 }
 0x1f7   : > { %v4175_v28 = vpop.f32.mrf.mxu1 }
 0x1f8   : > { %4355 = vst [vmem:[#allocation9_spill] sm:$0xff] %v4175_v28  ;;  %v3258_v55 = vpop.f32.mrf.mxu0 }
 0x1fa   : > { %v1911_v18 = vpop.f32.mrf.mxu0 }
 0x1fb   : > { %v3267_v40 = vpop.f32.mrf.mxu1 }
 0x1fc   : > { %v3261_v41 = vpop.f32.mrf.mxu0 }
 0x1fd   : > { %v2138_v21 = vpop.f32.mrf.mxu1 }
 0x1fe   : > { %v4177_v6 = vpop.f32.mrf.mxu0 }
 0x1ff   : > { %v3268_v53 = vpop.f32.mrf.mxu1 }
 0x200   : > { %v4179_v17 = vpop.f32.mrf.mxu0 }
 0x201   : > { %4356 = vst [vmem:[#allocation7_spill] sm:$0xff] %v4179_v17  ;;  %v2141_v42 = vpop.f32.mrf.mxu1 }
 0x202   : > { %v4181_v31 = vpop.f32.mrf.mxu0 }
 0x203   : > { %4357 = vst [vmem:[#allocation10_spill] sm:$0xff] %v4181_v31  ;;  %v1610_v31 = vadd.f32 %v3238_v30, %v1366_v7 }
 0x205   : > { %v1832_v28 = vadd.f32 %v3248_v63, %v1610_v31  ;;  %v1940_v63 = vadd.f32 %v1911_v18, %v1830_v14 }
 0x206   : > { %v3271_v2 = vpop.f32.mrf.mxu1 }
 0x207   : > { %v3277_v23 = vpop.f32.mrf.mxu0  ;;  %v1942_v61 = vadd.f32 %v3258_v55, %v1832_v28  ;;  %v2170_v55 = vadd.f32 %v2141_v42, %v1940_v63 }
 0x208   : > { %v4183_v8 = vpop.f32.mrf.mxu1 }
 0x209   : > { %4358 = vst [vmem:[#allocation8_spill] sm:$0xff] %v4183_v8  ;;  %v2361_v37 = vpop.f32.mrf.mxu0  ;;  %v1829_v8 = vadd.f32 %v1798_v52, %v1607_v60  ;;  %v1382_v52 = vadd.f32 %v4163_v27, %v4159_v19 }
 0x20a   : > { %v4185_v22 = vpop.f32.mrf.mxu1 }
 0x20b   : > { %4359 = vst [vmem:[#allocation15_spill] sm:$0xff] %v4185_v22  ;;  %v3278_v56 = vpop.f32.mrf.mxu0  ;;  %v1941_v22 = vadd.f32 %v3257_v13, %v1831_v20  ;;  %v1939_v34 = vadd.f32 %v1908_v39, %v1829_v8  ;;  %v2172_v13 = vadd.f32 %v3268_v53, %v1942_v61  ;;  %v1614_v54 = vadd.f32 %v4167_v43, %v1382_v52  ;;  %v4213_v43 = vld [vmem:[%s4271_s6] ss:$0 sm:$0xff] }
 0x20c   : > { %v4187_v47 = vpop.f32.mrf.mxu1 }
 0x20d   : > { %4360 = vst [vmem:[#allocation16_spill] sm:$0xff] %v4187_v47  ;;  %v2364_v12 = vpop.f32.mrf.mxu0  ;;  %v1379_v47 = vadd.f32 %v3231_v9, %v3221_v33  ;;  %v2171_v4 = vadd.f32 %v3267_v40, %v1941_v22  ;;  %v2169_v5 = vadd.f32 %v2138_v21, %v1939_v34  ;;  %v1611_v33 = vadd.f32 %v1592_v25, %v1371_v48 }
 0x20e   : > { %v3287_v45 = vpop.f32.mrf.mxu1  ;;  %v2395_v21 = vadd.f32 %v3278_v56, %v2172_v13  ;;  %v1836_v18 = vadd.f32 %v4173_v15, %v1614_v54  ;;  %v4361_v15 = vld [vmem:[#allocation9_spill] sm:$0xff] }
 0x20f   : > { %v3281_v29 = vpop.f32.mrf.mxu0  ;;  %v1613_v26 = vadd.f32 %v3241_v62, %v1379_v47  ;;  %v2394_v16 = vadd.f32 %v3277_v23, %v2171_v4  ;;  %v2392_v39 = vadd.f32 %v2361_v37, %v2169_v5  ;;  %v1833_v62 = vadd.f32 %v4171_v11, %v1611_v33 }
 0x210   : > { %v2471_v49 = vpop.f32.mrf.mxu1  ;;  %v2393_v11 = vadd.f32 %v2364_v12, %v2170_v55  ;;  %v4363_v37 = vld [vmem:[#allocation8_spill] sm:$0xff]  ;;  %v4364_v12 = vld [vmem:[#allocation10_spill] sm:$0xff] }
 0x211   : > { %v4189_v46 = vpop.f32.mrf.mxu0  ;;  %v1835_v9 = vadd.f32 %v3251_v58, %v1613_v26  ;;  %v2504_v40 = vadd.f32 %v3287_v45, %v2394_v16  ;;  %v2502_v19 = vadd.f32 %v2471_v49, %v2392_v39  ;;  %v1612_v58 = vadd.f32 %v4169_v51, %v1374_v50 }
 0x212   : > { %v3288_v57 = vpop.f32.mrf.mxu1  ;;  %v1943_v53 = vadd.f32 %v4177_v6, %v1833_v62  ;;  %v4362_v6 = vld [vmem:[#allocation7_spill] sm:$0xff] }
 0x213   : > { %v4191_v17 = vpop.f32.mrf.mxu0  ;;  %v1945_v35 = vadd.f32 %v3261_v41, %v1835_v9  ;;  %v2505_v41 = vadd.f32 %v3288_v57, %v2395_v21  ;;  %v1834_v8 = vadd.f32 %v4361_v15, %v1612_v58  ;;  %v4365_v20 = vld [vmem:[#allocation15_spill] sm:$0xff] }
 0x214   : > { %v2474_v10 = vpop.f32.mrf.mxu1  ;;  %v2173_v22 = vadd.f32 %v4363_v37, %v1943_v53  ;;  %v4366_v14 = vld [vmem:[#allocation16_spill] sm:$0xff] }
 0x215   : > { %v4193_v24 = vpop.f32.mrf.mxu0  ;;  %v2175_v23 = vadd.f32 %v3271_v2, %v1945_v35  ;;  %v1946_v2 = vadd.f32 %v4362_v6, %v1836_v18  ;;  %v2503_v45 = vadd.f32 %v2474_v10, %v2393_v11  ;;  %v1944_v60 = vadd.f32 %v4364_v12, %v1834_v8 }
 0x216   : > { %v3291_v36 = vpop.f32.mrf.mxu1  ;;  %v2396_v38 = vadd.f32 %v4189_v46, %v2173_v22 }
 0x217   : > { %v3297_v30 = vpop.f32.mrf.mxu0  ;;  %v2398_v56 = vadd.f32 %v3281_v29, %v2175_v23  ;;  %v2176_v57 = vadd.f32 %v4365_v20, %v1946_v2  ;;  %v2174_v61 = vadd.f32 %v4366_v14, %v1944_v60 }
 0x218   : > { %v2487_v44 = vpop.f32.mrf.mxu1  ;;  %v2734_v27 = vadd.f32 %v3297_v30, %v2504_v40 }
 0x219   : > { %v2701_v31 = vpop.f32.mrf.mxu0  ;;  %v2508_v1 = vadd.f32 %v3291_v36, %v2398_v56  ;;  %v2399_v5 = vadd.f32 %v4191_v17, %v2176_v57  ;;  %v2506_v16 = vadd.f32 %v2487_v44, %v2396_v38  ;;  %v2397_v13 = vadd.f32 %v4193_v24, %v2174_v61 }
 0x21a   : > { %v3292_v28 = vpop.f32.mrf.mxu1  ;;  %v2732_v51 = vadd.f32 %v2701_v31, %v2502_v19  ;;  %v2749_v0 = vadd.f32 %v4208_v3, %v2734_v27 }
 0x21b   : > { %v3298_v25 = vpop.f32.mrf.mxu0  ;;  %v2509_v17 = vadd.f32 %v3292_v28, %v2399_v5 }
 0x21c   : > { %v2490_v32 = vpop.f32.mrf.mxu1  ;;  %v2735_v59 = vadd.f32 %v3298_v25, %v2505_v41  ;;  %v2747_v4 = vadd.f32 %v4208_v3, %v2732_v51 }
 0x21d   : > { %v2704_v42 = vpop.f32.mrf.mxu0  ;;  %v2507_v62 = vadd.f32 %v2490_v32, %v2397_v13 }
 0x21e   : > { %v3307_v47 = vpop.f32.mrf.mxu1  ;;  %v2733_v29 = vadd.f32 %v2704_v42, %v2503_v45  ;;  %v2750_v30 = vadd.f32 %v4208_v3, %v2735_v59 }
 0x21f   : > { %v2813_v49 = vadd.f32 %v3307_v47, %v4213_v43  ;;  %v3301_v7 = vpop.f32.mrf.mxu0 }
 0x220   : > { %v2804_v34 = vpop.f32.mrf.mxu1  ;;  %v2738_v46 = vadd.f32 %v3301_v7, %v2508_v1  ;;  %v2748_v40 = vadd.f32 %v4208_v3, %v2733_v29 }
 0x221   : > { %v2837_v48 = vadd.f32 %v2813_v49, %v2749_v0  ;;  %v2805_v10 = vadd.f32 %v4213_v43, %v2804_v34  ;;  %v2717_v26 = vpop.f32.mrf.mxu0 }
 0x222   : > { %v3308_v36 = vpop.f32.mrf.mxu1  ;;  %v2736_v44 = vadd.f32 %v2717_v26, %v2506_v16  ;;  %v2753_v35 = vadd.f32 %v4208_v3, %v2738_v46 }
 0x223   : > { %v2845_v52 = vmax.f32 %v2837_v48, 0.0  ;;  %v2835_v33 = vadd.f32 %v2805_v10, %v2747_v4  ;;  %v2816_v9 = vadd.f32 %v3308_v36, %v4213_v43  ;;  %v3302_v63 = vpop.f32.mrf.mxu0 }
 0x224   : > { %v2807_v39 = vpop.f32.mrf.mxu1  ;;  %v2739_v28 = vadd.f32 %v3302_v63, %v2509_v17  ;;  %v2751_v25 = vadd.f32 %v4208_v3, %v2736_v44 }
 0x225   : > { %2853 = vst.msk [vmem:[%s4231_s22 + $0x10] sm:$0xff] %vm1211_vm11, %v2845_v52  ;;  %v2843_v31 = vmax.f32 %v2835_v33, 0.0  ;;  %v2838_v50 = vadd.f32 %v2816_v9, %v2750_v30  ;;  %v2808_v54 = vadd.f32 %v4213_v43, %v2807_v39  ;;  %v2720_v55 = vpop.f32.mrf.mxu0 }
 0x226   : > { %v3311_v21 = vpop.f32.mrf.mxu1  ;;  %v2737_v53 = vadd.f32 %v2720_v55, %v2507_v62  ;;  %v2754_v41 = vadd.f32 %v4208_v3, %v2739_v28 }
 0x227   : > { %2851 = vst.msk [vmem:[%s4231_s22] sm:$0xff] %vm1211_vm11, %v2843_v31  ;;  %v2846_v24 = vmax.f32 %v2838_v50, 0.0  ;;  %v2836_v19 = vadd.f32 %v2808_v54, %v2748_v40  ;;  %v2829_v27 = vadd.f32 %v3311_v21, %v4213_v43 }
 0x228   : > { %v2820_v58 = vpop.f32.mrf.mxu1  ;;  %v2752_v6 = vadd.f32 %v4208_v3, %v2737_v53 }
 0x229   : > { %2854 = vst.msk [vmem:[%s4231_s22 + $0x18] sm:$0xff] %vm1211_vm11, %v2846_v24  ;;  %v2844_v18 = vmax.f32 %v2836_v19, 0.0  ;;  %v2841_v23 = vadd.f32 %v2829_v27, %v2753_v35  ;;  %v2821_v32 = vadd.f32 %v4213_v43, %v2820_v58 }
 0x22a   : > { %v3312_v11 = vpop.f32.mrf.mxu1 }
 0x22b   : > { %2852 = vst.msk [vmem:[%s4231_s22 + $0x8] sm:$0xff] %vm1211_vm11, %v2844_v18  ;;  %v2849_v51 = vmax.f32 %v2841_v23, 0.0  ;;  %v2839_v42 = vadd.f32 %v2821_v32, %v2751_v25  ;;  %v2832_v15 = vadd.f32 %v3312_v11, %v4213_v43 }
 0x22c   : > { %v2823_v8 = vpop.f32.mrf.mxu1 }
 0x22d   : > { %2857 = vst.msk [vmem:[%s4231_s22 + $0x30] sm:$0xff] %vm1211_vm11, %v2849_v51  ;;  %v2847_v2 = vmax.f32 %v2839_v42, 0.0  ;;  %v2842_v37 = vadd.f32 %v2832_v15, %v2754_v41  ;;  %v2824_v22 = vadd.f32 %v4213_v43, %v2823_v8 }
 0x22f   : > { %2855 = vst.msk [vmem:[%s4231_s22 + $0x20] sm:$0xff] %vm1211_vm11, %v2847_v2  ;;  %v2850_v56 = vmax.f32 %v2842_v37, 0.0  ;;  %v2840_v47 = vadd.f32 %v2824_v22, %v2752_v6 }
 0x231   : > { %2858 = vst.msk [vmem:[%s4231_s22 + $0x38] sm:$0xff] %vm1211_vm11, %v2850_v56  ;;  %v2848_v45 = vmax.f32 %v2840_v47, 0.0 }
 0x233   : > { %2856 = vst.msk [vmem:[%s4231_s22 + $0x28] sm:$0xff] %vm1211_vm11, %v2848_v45 }
 0x234 PF: > { %s17_s24 = sadd.s32 1, %s3364_s24  }
 0x235   : > { %p14_p4 = scmp.ge.s32.totalorder %s17_s24, 4  }
 0x237   :  { %16 = sbr.rel (!%p14_p4) target bundleno = 1 (0x1), region = 92 }

</bundles_post_ra>
